<compile_context>
chip_gen: v7x
topology: tpu7x:2x2x1
jax: 0.10.0
libtpu: 0.0.40
codegen_flags: <defaults>
</compile_context>

<pallas_src>
import math

import jax
import jax.numpy as jnp
from jax.experimental import pallas as pl
from jax.experimental.pallas import tpu as pltpu

EMBED_DIM = 32
NUM_HEADS = 8
HEAD_DIM = EMBED_DIM // NUM_HEADS
MLP_RATIO = 4
HIDDEN = EMBED_DIM * MLP_RATIO
SEQ = 8
BATCH = 2
BN = BATCH * SEQ                     # 16 rows of flattened activations
ZB = BATCH * NUM_HEADS               # 16 batched attention "rows" (z = h*B + b)
EPS = 1e-5
SCALE = 1.0 / math.sqrt(HEAD_DIM)
INV_SQRT2 = 1.0 / math.sqrt(2.0)
NEG_BIG = -1e30                      # additive mask value (exp -> 0 after max-sub)
LANES = 128                          # slab lane width (one lane tile)

# ---- params slab row offsets (all pre-broadcast to BN rows, except rel) ----
OFF_N1G, OFF_N1B = 0 * BN, 1 * BN    # TransformerBlock.norm1 gamma / beta
OFF_ANG, OFF_ANB = 2 * BN, 3 * BN    # CausalSelfAttention.norm gamma / beta
OFF_N2G, OFF_N2B = 4 * BN, 5 * BN    # TransformerBlock.norm2 gamma / beta
OFF_BO, OFF_B2 = 6 * BN, 7 * BN      # out_proj bias, mlp fc2 bias
OFF_BQKV = 8 * BN                    # fused qkv bias (Q part pre-scaled), 96 lanes
OFF_B1 = 9 * BN                      # mlp fc1 bias, 128 lanes
OFF_REL = 10 * BN                    # masked rel-pos bias, (Z*N, N) rows
PSLAB_ROWS = OFF_REL + ZB * SEQ      # 160 + 128 = 288

# ---- weights slab row offsets ----
OFF_WQKV = 0                         # (C, 3C), Q columns pre-scaled, 96 lanes
OFF_W1 = OFF_WQKV + EMBED_DIM        # (C, 4C), 128 lanes
OFF_WO = OFF_W1 + EMBED_DIM          # (C, C)
OFF_W2 = OFF_WO + EMBED_DIM          # (4C, C)
WSLAB_ROWS = OFF_W2 + HIDDEN         # 96 + 128 = 224


# ----------------------------- kernel ---------------------------------------
def transformer_block_kernel(x_ref, p_ref, w_ref, o_ref, q_s, k_s, v_s, attn_s):
    x = x_ref[...].astype(jnp.float32)                      # (BN, C)

    def pslice(off, width):
        return p_ref[off:off + BN, 0:width]

    def layernorm(v, goff, boff):
        mean = jnp.mean(v, axis=-1, keepdims=True)
        var = jnp.mean(v * v, axis=-1, keepdims=True) - mean * mean
        return ((v - mean) * jax.lax.rsqrt(var + EPS)
                * pslice(goff, EMBED_DIM) + pslice(boff, EMBED_DIM))

    # ---- attention branch: x + out_proj(attn(attn.norm(norm1(x)))) ----
    h = layernorm(x, OFF_N1G, OFF_N1B)                      # TransformerBlock.norm1
    h = layernorm(h, OFF_ANG, OFF_ANB)                      # CausalSelfAttention.norm

    # fused Q/K/V projection (scale already folded into Q weight/bias)
    wqkv = w_ref[OFF_WQKV:OFF_WQKV + EMBED_DIM, 0:3 * EMBED_DIM]
    qkv = (jnp.dot(h, wqkv, preferred_element_type=jnp.float32)
           + pslice(OFF_BQKV, 3 * EMBED_DIM))               # (BN, 3C)

    # stage per-head tiles into (Z, N, D) scratch (free reshapes + static stores)
    for hh in range(NUM_HEADS):
        z = hh * BATCH
        qo = hh * HEAD_DIM
        ko = EMBED_DIM + hh * HEAD_DIM
        vo = 2 * EMBED_DIM + hh * HEAD_DIM
        q_s[z:z + BATCH] = qkv[:, qo:qo + HEAD_DIM].reshape(BATCH, SEQ, HEAD_DIM)
        k_s[z:z + BATCH] = qkv[:, ko:ko + HEAD_DIM].reshape(BATCH, SEQ, HEAD_DIM)
        v_s[z:z + BATCH] = qkv[:, vo:vo + HEAD_DIM].reshape(BATCH, SEQ, HEAD_DIM)

    # masked rel-pos bias, prepacked as (Z*N, N) rows -> free reshape to (Z,N,N)
    rel = p_ref[OFF_REL:OFF_REL + ZB * SEQ, 0:SEQ].reshape(ZB, SEQ, SEQ)

    # batched scores + ONE softmax over all heads/batches
    s = jnp.einsum('znd,zmd->znm', q_s[...], k_s[...],
                   preferred_element_type=jnp.float32)      # (Z, N, N)
    s = s + rel                                             # rel + causal mask
    s = s - jnp.max(s, axis=-1, keepdims=True)
    p = jnp.exp(s)
    p = p * pl.reciprocal(jnp.sum(p, axis=-1, keepdims=True), approx=True)

    o = jnp.einsum('znm,zmd->znd', p, v_s[...],
                   preferred_element_type=jnp.float32)      # (Z, N, D)

    # reassemble head outputs into (BN, C), then ONE out_proj matmul
    for hh in range(NUM_HEADS):
        z = hh * BATCH
        attn_s[:, hh * HEAD_DIM:(hh + 1) * HEAD_DIM] = (
            o[z:z + BATCH].reshape(BN, HEAD_DIM))
    wo = w_ref[OFF_WO:OFF_WO + EMBED_DIM, 0:EMBED_DIM]
    x1 = (x + jnp.dot(attn_s[...], wo, preferred_element_type=jnp.float32)
          + pslice(OFF_BO, EMBED_DIM))                      # residual 1

    # ---- MLP branch: x1 + fc2(gelu(fc1(norm2(x1)))) ----
    h2 = layernorm(x1, OFF_N2G, OFF_N2B)
    w1 = w_ref[OFF_W1:OFF_W1 + EMBED_DIM, 0:HIDDEN]
    m = jnp.dot(h2, w1, preferred_element_type=jnp.float32) + pslice(OFF_B1, HIDDEN)
    m = 0.5 * m * (1.0 + jax.lax.erf(m * INV_SQRT2))        # exact GELU
    w2 = w_ref[OFF_W2:OFF_W2 + HIDDEN, 0:EMBED_DIM]
    m = jnp.dot(m, w2, preferred_element_type=jnp.float32) + pslice(OFF_B2, EMBED_DIM)

    o_ref[...] = (x1 + m).astype(o_ref.dtype)


# ----------------------------- glue ------------------------------------------
def bilinear_align_corners(img, out_hw):
    """F.interpolate(mode='bilinear', align_corners=True). img: (H, in_h, in_w)."""
    in_h, in_w = img.shape[-2:]
    oh, ow = out_hw
    ys = jnp.linspace(0.0, in_h - 1.0, oh)
    xs = jnp.linspace(0.0, in_w - 1.0, ow)
    y0 = jnp.floor(ys).astype(jnp.int32)
    x0 = jnp.floor(xs).astype(jnp.int32)
    y1 = jnp.minimum(y0 + 1, in_h - 1)
    x1 = jnp.minimum(x0 + 1, in_w - 1)
    wy = (ys - y0.astype(jnp.float32)).reshape(1, oh, 1)
    wx = (xs - x0.astype(jnp.float32)).reshape(1, 1, ow)
    a = img[:, y0][:, :, x0]
    b = img[:, y0][:, :, x1]
    c = img[:, y1][:, :, x0]
    d = img[:, y1][:, :, x1]
    top = a * (1.0 - wx) + b * wx
    bot = c * (1.0 - wx) + d * wx
    return top * (1.0 - wy) + bot * wy


def prepare_packed_params(params, seq_len):
    """One-time (hoisted) preprocessing: rel resize + mask/scale folding + packing."""
    N = seq_len

    # rel-pos bias: bilinear resize, zero last row/col, FOLD the causal mask in,
    # then repeat over batch so z = head*B + batch matches the kernel's scratch order.
    rel = bilinear_align_corners(params["rel_pos_bias"], (N, N))
    rel = rel.at[:, -1, :].set(0.0).at[:, :, -1].set(0.0)              # (H, N, N)
    row = jnp.arange(N)[:, None]
    col = jnp.arange(N)[None, :]
    rel = rel + jnp.where(col > row, NEG_BIG, 0.0)[None]               # causal fold
    rel_z = jnp.repeat(rel, BATCH, axis=0)                             # (Z, N, N)

    # fold attention scale into Q weight/bias; fuse Q/K/V
    wqkv = jnp.concatenate([params["wq"] * SCALE, params["wk"], params["wv"]], axis=1)
    bqkv = jnp.concatenate([params["bq"] * SCALE, params["bk"], params["bv"]], axis=1)

    bcast = lambda v: jnp.broadcast_to(v, (BN, v.shape[-1]))

    def place(slab, roff, arr):
        r, c = arr.shape
        return slab.at[roff:roff + r, 0:c].set(arr)

    pslab = jnp.zeros((PSLAB_ROWS, LANES), jnp.float32)
    pslab = place(pslab, OFF_N1G, bcast(params["n1_g"]))
    pslab = place(pslab, OFF_N1B, bcast(params["n1_b"]))
    pslab = place(pslab, OFF_ANG, bcast(params["an_g"]))
    pslab = place(pslab, OFF_ANB, bcast(params["an_b"]))
    pslab = place(pslab, OFF_N2G, bcast(params["n2_g"]))
    pslab = place(pslab, OFF_N2B, bcast(params["n2_b"]))
    pslab = place(pslab, OFF_BO, bcast(params["bo"]))
    pslab = place(pslab, OFF_B2, bcast(params["b2"]))
    pslab = place(pslab, OFF_BQKV, bcast(bqkv))
    pslab = place(pslab, OFF_B1, bcast(params["b1"]))
    pslab = place(pslab, OFF_REL, rel_z.reshape(ZB * N, N))

    wslab = jnp.zeros((WSLAB_ROWS, LANES), jnp.float32)
    wslab = place(wslab, OFF_WQKV, wqkv)
    wslab = place(wslab, OFF_W1, params["w1"])
    wslab = place(wslab, OFF_WO, params["wo"])
    wslab = place(wslab, OFF_W2, params["w2"])
    return pslab, wslab


@jax.jit
def transformer_block(x, pslab, wslab):
    B, N, C = x.shape
    out = pl.pallas_call(
        transformer_block_kernel,
        out_shape=jax.ShapeDtypeStruct((B * N, C), x.dtype),
        # gridless: whole (tiny) working set lives in VMEM for one invocation.
        scratch_shapes=[
            pltpu.VMEM((ZB, SEQ, HEAD_DIM), jnp.float32),   # q staging
            pltpu.VMEM((ZB, SEQ, HEAD_DIM), jnp.float32),   # k staging
            pltpu.VMEM((ZB, SEQ, HEAD_DIM), jnp.float32),   # v staging
            pltpu.VMEM((BN, EMBED_DIM), jnp.float32),       # concatenated head outs
        ],
        compiler_params=pltpu.CompilerParams(vmem_limit_bytes=4 * 1024 * 1024),
        cost_estimate=pl.CostEstimate(flops=420_000, transcendentals=4_200,
                                      bytes_accessed=280_000),
    )(x.reshape(B * N, C), pslab, wslab)
    return out.reshape(B, N, C)


# ----------------------------- reference (pure JAX) ---------------------------
def reference(x, params):
    B, N, C = x.shape

    def ln(v, g, b):
        m = v.mean(-1, keepdims=True)
        var = ((v - m) ** 2).mean(-1, keepdims=True)
        return (v - m) / jnp.sqrt(var + EPS) * g + b

    rel = bilinear_align_corners(params["rel_pos_bias"], (N, N))
    rel = rel.at[:, -1, :].set(0.0).at[:, :, -1].set(0.0)

    h = ln(ln(x, params["n1_g"], params["n1_b"]), params["an_g"], params["an_b"])
    q = h @ params["wq"] + params["bq"]
    k = h @ params["wk"] + params["bk"]
    v = h @ params["wv"] + params["bv"]
    q = q.reshape(B, N, NUM_HEADS, HEAD_DIM).transpose(0, 2, 1, 3)
    k = k.reshape(B, N, NUM_HEADS, HEAD_DIM).transpose(0, 2, 1, 3)
    v = v.reshape(B, N, NUM_HEADS, HEAD_DIM).transpose(0, 2, 1, 3)
    scores = jnp.einsum("bhnd,bhmd->bhnm", q, k) * SCALE + rel[None]
    mask = jnp.triu(jnp.ones((N, N), bool), 1)
    scores = jnp.where(mask, -jnp.inf, scores)
    p = jax.nn.softmax(scores, axis=-1)
    out = jnp.einsum("bhnm,bhmd->bhnd", p, v).transpose(0, 2, 1, 3).reshape(B, N, C)
    out = out @ params["wo"] + params["bo"]
    x1 = x + out
    h2 = ln(x1, params["n2_g"], params["n2_b"])
    m = h2 @ params["w1"] + params["b1"]
    m = 0.5 * m * (1.0 + jax.lax.erf(m * INV_SQRT2))
    return x1 + m @ params["w2"] + params["b2"]


# ----------------------------- main -------------------------------------------
def init_params(key):
    ks = jax.random.split(key, 24)
    r = lambda k, shape, s=0.05: jax.random.normal(k, shape, jnp.float32) * s
    return dict(
        n1_g=1.0 + r(ks[0], (1, EMBED_DIM)), n1_b=r(ks[1], (1, EMBED_DIM)),
        an_g=1.0 + r(ks[2], (1, EMBED_DIM)), an_b=r(ks[3], (1, EMBED_DIM)),
        wq=r(ks[4], (EMBED_DIM, EMBED_DIM)), bq=r(ks[5], (1, EMBED_DIM)),
        wk=r(ks[6], (EMBED_DIM, EMBED_DIM)), bk=r(ks[7], (1, EMBED_DIM)),
        wv=r(ks[8], (EMBED_DIM, EMBED_DIM)), bv=r(ks[9], (1, EMBED_DIM)),
        wo=r(ks[10], (EMBED_DIM, EMBED_DIM)), bo=r(ks[11], (1, EMBED_DIM)),
        rel_pos_bias=r(ks[12], (NUM_HEADS, 32, 32)),
        n2_g=1.0 + r(ks[13], (1, EMBED_DIM)), n2_b=r(ks[14], (1, EMBED_DIM)),
        w1=r(ks[15], (EMBED_DIM, HIDDEN)), b1=r(ks[16], (1, HIDDEN)),
        w2=r(ks[17], (HIDDEN, EMBED_DIM)), b2=r(ks[18], (1, EMBED_DIM)),
    )


if __name__ == "__main__":
    key = jax.random.PRNGKey(0)
    kx, kp = jax.random.split(key)
    x = jax.random.normal(kx, (BATCH, SEQ, EMBED_DIM), jnp.float32)
    params = init_params(kp)

    pslab, wslab = prepare_packed_params(params, SEQ)   # hoisted, done once
    pslab = jax.block_until_ready(pslab)
    wslab = jax.block_until_ready(wslab)

    out = transformer_block(x, pslab, wslab)
    out = jax.block_until_ready(out)

    ref = reference(x, params)
    assert out.shape == (BATCH, SEQ, EMBED_DIM)
    assert bool(jnp.allclose(out, ref, atol=2e-3, rtol=2e-3)), "mismatch vs JAX reference"
    print("KERNEL_OK")
</pallas_src>

<mosaic_0001>
module attributes {stable_mosaic.version = 11 : i64} {
  func.func @transformer_block_kernel(%arg0: memref<16x32xf32, #tpu.memory_space<vmem>>, %arg1: memref<288x128xf32, #tpu.memory_space<vmem>>, %arg2: memref<224x128xf32, #tpu.memory_space<vmem>>, %arg3: memref<16x32xf32, #tpu.memory_space<vmem>>, %arg4: memref<16x8x4xf32, #tpu.memory_space<vmem>>, %arg5: memref<16x8x4xf32, #tpu.memory_space<vmem>>, %arg6: memref<16x8x4xf32, #tpu.memory_space<vmem>>, %arg7: memref<16x32xf32, #tpu.memory_space<vmem>>) attributes {dimension_semantics = [], scalar_prefetch = 0 : i64, scratch_operands = 4 : i64, tpu.core_type = #tpu.core_type<tc>} {
    %c0 = arith.constant 0 : index
    %c0_0 = arith.constant 0 : index
    %0 = vector.load %arg0[%c0, %c0_0] : memref<16x32xf32, #tpu.memory_space<vmem>>, vector<16x32xf32>
    %cst = arith.constant dense<0.000000e+00> : vector<16xf32>
    %1 = vector.multi_reduction <add>, %0, %cst [1] : vector<16x32xf32> to vector<16xf32>
    %2 = vector.shape_cast %1 : vector<16xf32> to vector<16x1xf32>
    %cst_1 = arith.constant 3.200000e+01 : f32
    %3 = vector.broadcast %cst_1 : f32 to vector<16x1xf32>
    %4 = arith.divf %2, %3 : vector<16x1xf32>
    %5 = arith.mulf %0, %0 : vector<16x32xf32>
    %cst_2 = arith.constant dense<0.000000e+00> : vector<16xf32>
    %6 = vector.multi_reduction <add>, %5, %cst_2 [1] : vector<16x32xf32> to vector<16xf32>
    %7 = vector.shape_cast %6 : vector<16xf32> to vector<16x1xf32>
    %cst_3 = arith.constant 3.200000e+01 : f32
    %8 = vector.broadcast %cst_3 : f32 to vector<16x1xf32>
    %9 = arith.divf %7, %8 : vector<16x1xf32>
    %10 = arith.mulf %4, %4 : vector<16x1xf32>
    %11 = arith.subf %9, %10 : vector<16x1xf32>
    %12 = vector.broadcast %4 : vector<16x1xf32> to vector<16x32xf32>
    %13 = arith.subf %0, %12 : vector<16x32xf32>
    %cst_4 = arith.constant 9.99999974E-6 : f32
    %14 = vector.broadcast %cst_4 : f32 to vector<16x1xf32>
    %15 = arith.addf %11, %14 : vector<16x1xf32>
    %16 = math.rsqrt %15 : vector<16x1xf32>
    %17 = vector.broadcast %16 : vector<16x1xf32> to vector<16x32xf32>
    %18 = arith.mulf %13, %17 : vector<16x32xf32>
    %c0_5 = arith.constant 0 : index
    %c0_6 = arith.constant 0 : index
    %19 = vector.load %arg1[%c0_5, %c0_6] : memref<288x128xf32, #tpu.memory_space<vmem>>, vector<16x32xf32>
    %20 = arith.mulf %18, %19 : vector<16x32xf32>
    %c16 = arith.constant 16 : index
    %c0_7 = arith.constant 0 : index
    %21 = vector.load %arg1[%c16, %c0_7] : memref<288x128xf32, #tpu.memory_space<vmem>>, vector<16x32xf32>
    %22 = arith.addf %20, %21 : vector<16x32xf32>
    %cst_8 = arith.constant dense<0.000000e+00> : vector<16xf32>
    %23 = vector.multi_reduction <add>, %22, %cst_8 [1] : vector<16x32xf32> to vector<16xf32>
    %24 = vector.shape_cast %23 : vector<16xf32> to vector<16x1xf32>
    %cst_9 = arith.constant 3.200000e+01 : f32
    %25 = vector.broadcast %cst_9 : f32 to vector<16x1xf32>
    %26 = arith.divf %24, %25 : vector<16x1xf32>
    %27 = arith.mulf %22, %22 : vector<16x32xf32>
    %cst_10 = arith.constant dense<0.000000e+00> : vector<16xf32>
    %28 = vector.multi_reduction <add>, %27, %cst_10 [1] : vector<16x32xf32> to vector<16xf32>
    %29 = vector.shape_cast %28 : vector<16xf32> to vector<16x1xf32>
    %cst_11 = arith.constant 3.200000e+01 : f32
    %30 = vector.broadcast %cst_11 : f32 to vector<16x1xf32>
    %31 = arith.divf %29, %30 : vector<16x1xf32>
    %32 = arith.mulf %26, %26 : vector<16x1xf32>
    %33 = arith.subf %31, %32 : vector<16x1xf32>
    %34 = vector.broadcast %26 : vector<16x1xf32> to vector<16x32xf32>
    %35 = arith.subf %22, %34 : vector<16x32xf32>
    %cst_12 = arith.constant 9.99999974E-6 : f32
    %36 = vector.broadcast %cst_12 : f32 to vector<16x1xf32>
    %37 = arith.addf %33, %36 : vector<16x1xf32>
    %38 = math.rsqrt %37 : vector<16x1xf32>
    %39 = vector.broadcast %38 : vector<16x1xf32> to vector<16x32xf32>
    %40 = arith.mulf %35, %39 : vector<16x32xf32>
    %c32 = arith.constant 32 : index
    %c0_13 = arith.constant 0 : index
    %41 = vector.load %arg1[%c32, %c0_13] : memref<288x128xf32, #tpu.memory_space<vmem>>, vector<16x32xf32>
    %42 = arith.mulf %40, %41 : vector<16x32xf32>
    %c48 = arith.constant 48 : index
    %c0_14 = arith.constant 0 : index
    %43 = vector.load %arg1[%c48, %c0_14] : memref<288x128xf32, #tpu.memory_space<vmem>>, vector<16x32xf32>
    %44 = arith.addf %42, %43 : vector<16x32xf32>
    %c0_15 = arith.constant 0 : index
    %c0_16 = arith.constant 0 : index
    %45 = vector.load %arg2[%c0_15, %c0_16] : memref<224x128xf32, #tpu.memory_space<vmem>>, vector<32x96xf32>
    %cst_17 = arith.constant dense<0.000000e+00> : vector<16x96xf32>
    %46 = tpu.matmul %44, %45, %cst_17 {dimension_numbers = #tpu.dot_dimension_numbers<[1], [0], [0], [1], [0, 0, 1, 1], [], []>} : vector<16x32xf32>, vector<32x96xf32>, vector<16x96xf32> -> vector<16x96xf32>
    %c128 = arith.constant 128 : index
    %c0_18 = arith.constant 0 : index
    %47 = vector.load %arg1[%c128, %c0_18] : memref<288x128xf32, #tpu.memory_space<vmem>>, vector<16x96xf32>
    %48 = arith.addf %46, %47 : vector<16x96xf32>
    %49 = vector.extract_strided_slice %48 {offsets = [0, 0], sizes = [16, 4], strides = [1, 1]} : vector<16x96xf32> to vector<16x4xf32>
    %50 = vector.shape_cast %49 : vector<16x4xf32> to vector<2x8x4xf32>
    %c0_19 = arith.constant 0 : index
    %c0_20 = arith.constant 0 : index
    %c0_21 = arith.constant 0 : index
    %51 = vector.load %arg4[%c0_19, %c0_20, %c0_21] : memref<16x8x4xf32, #tpu.memory_space<vmem>>, vector<2x8x4xf32>
    tpu.vector_store %arg4[%c0_19, %c0_20, %c0_21], %50 {strides = array<i32>} : memref<16x8x4xf32, #tpu.memory_space<vmem>>, vector<2x8x4xf32>,
    %52 = vector.extract_strided_slice %48 {offsets = [0, 32], sizes = [16, 4], strides = [1, 1]} : vector<16x96xf32> to vector<16x4xf32>
    %53 = vector.shape_cast %52 : vector<16x4xf32> to vector<2x8x4xf32>
    %c0_22 = arith.constant 0 : index
    %c0_23 = arith.constant 0 : index
    %c0_24 = arith.constant 0 : index
    %54 = vector.load %arg5[%c0_22, %c0_23, %c0_24] : memref<16x8x4xf32, #tpu.memory_space<vmem>>, vector<2x8x4xf32>
    tpu.vector_store %arg5[%c0_22, %c0_23, %c0_24], %53 {strides = array<i32>} : memref<16x8x4xf32, #tpu.memory_space<vmem>>, vector<2x8x4xf32>,
    %55 = vector.extract_strided_slice %48 {offsets = [0, 64], sizes = [16, 4], strides = [1, 1]} : vector<16x96xf32> to vector<16x4xf32>
    %56 = vector.shape_cast %55 : vector<16x4xf32> to vector<2x8x4xf32>
    %c0_25 = arith.constant 0 : index
    %c0_26 = arith.constant 0 : index
    %c0_27 = arith.constant 0 : index
    %57 = vector.load %arg6[%c0_25, %c0_26, %c0_27] : memref<16x8x4xf32, #tpu.memory_space<vmem>>, vector<2x8x4xf32>
    tpu.vector_store %arg6[%c0_25, %c0_26, %c0_27], %56 {strides = array<i32>} : memref<16x8x4xf32, #tpu.memory_space<vmem>>, vector<2x8x4xf32>,
    %58 = vector.extract_strided_slice %48 {offsets = [0, 4], sizes = [16, 4], strides = [1, 1]} : vector<16x96xf32> to vector<16x4xf32>
    %59 = vector.shape_cast %58 : vector<16x4xf32> to vector<2x8x4xf32>
    %c2 = arith.constant 2 : index
    %c0_28 = arith.constant 0 : index
    %c0_29 = arith.constant 0 : index
    %60 = vector.load %arg4[%c2, %c0_28, %c0_29] : memref<16x8x4xf32, #tpu.memory_space<vmem>>, vector<2x8x4xf32>
    tpu.vector_store %arg4[%c2, %c0_28, %c0_29], %59 {strides = array<i32>} : memref<16x8x4xf32, #tpu.memory_space<vmem>>, vector<2x8x4xf32>,
    %61 = vector.extract_strided_slice %48 {offsets = [0, 36], sizes = [16, 4], strides = [1, 1]} : vector<16x96xf32> to vector<16x4xf32>
    %62 = vector.shape_cast %61 : vector<16x4xf32> to vector<2x8x4xf32>
    %c2_30 = arith.constant 2 : index
    %c0_31 = arith.constant 0 : index
    %c0_32 = arith.constant 0 : index
    %63 = vector.load %arg5[%c2_30, %c0_31, %c0_32] : memref<16x8x4xf32, #tpu.memory_space<vmem>>, vector<2x8x4xf32>
    tpu.vector_store %arg5[%c2_30, %c0_31, %c0_32], %62 {strides = array<i32>} : memref<16x8x4xf32, #tpu.memory_space<vmem>>, vector<2x8x4xf32>,
    %64 = vector.extract_strided_slice %48 {offsets = [0, 68], sizes = [16, 4], strides = [1, 1]} : vector<16x96xf32> to vector<16x4xf32>
    %65 = vector.shape_cast %64 : vector<16x4xf32> to vector<2x8x4xf32>
    %c2_33 = arith.constant 2 : index
    %c0_34 = arith.constant 0 : index
    %c0_35 = arith.constant 0 : index
    %66 = vector.load %arg6[%c2_33, %c0_34, %c0_35] : memref<16x8x4xf32, #tpu.memory_space<vmem>>, vector<2x8x4xf32>
    tpu.vector_store %arg6[%c2_33, %c0_34, %c0_35], %65 {strides = array<i32>} : memref<16x8x4xf32, #tpu.memory_space<vmem>>, vector<2x8x4xf32>,
    %67 = vector.extract_strided_slice %48 {offsets = [0, 8], sizes = [16, 4], strides = [1, 1]} : vector<16x96xf32> to vector<16x4xf32>
    %68 = vector.shape_cast %67 : vector<16x4xf32> to vector<2x8x4xf32>
    %c4 = arith.constant 4 : index
    %c0_36 = arith.constant 0 : index
    %c0_37 = arith.constant 0 : index
    %69 = vector.load %arg4[%c4, %c0_36, %c0_37] : memref<16x8x4xf32, #tpu.memory_space<vmem>>, vector<2x8x4xf32>
    tpu.vector_store %arg4[%c4, %c0_36, %c0_37], %68 {strides = array<i32>} : memref<16x8x4xf32, #tpu.memory_space<vmem>>, vector<2x8x4xf32>,
    %70 = vector.extract_strided_slice %48 {offsets = [0, 40], sizes = [16, 4], strides = [1, 1]} : vector<16x96xf32> to vector<16x4xf32>
    %71 = vector.shape_cast %70 : vector<16x4xf32> to vector<2x8x4xf32>
    %c4_38 = arith.constant 4 : index
    %c0_39 = arith.constant 0 : index
    %c0_40 = arith.constant 0 : index
    %72 = vector.load %arg5[%c4_38, %c0_39, %c0_40] : memref<16x8x4xf32, #tpu.memory_space<vmem>>, vector<2x8x4xf32>
    tpu.vector_store %arg5[%c4_38, %c0_39, %c0_40], %71 {strides = array<i32>} : memref<16x8x4xf32, #tpu.memory_space<vmem>>, vector<2x8x4xf32>,
    %73 = vector.extract_strided_slice %48 {offsets = [0, 72], sizes = [16, 4], strides = [1, 1]} : vector<16x96xf32> to vector<16x4xf32>
    %74 = vector.shape_cast %73 : vector<16x4xf32> to vector<2x8x4xf32>
    %c4_41 = arith.constant 4 : index
    %c0_42 = arith.constant 0 : index
    %c0_43 = arith.constant 0 : index
    %75 = vector.load %arg6[%c4_41, %c0_42, %c0_43] : memref<16x8x4xf32, #tpu.memory_space<vmem>>, vector<2x8x4xf32>
    tpu.vector_store %arg6[%c4_41, %c0_42, %c0_43], %74 {strides = array<i32>} : memref<16x8x4xf32, #tpu.memory_space<vmem>>, vector<2x8x4xf32>,
    %76 = vector.extract_strided_slice %48 {offsets = [0, 12], sizes = [16, 4], strides = [1, 1]} : vector<16x96xf32> to vector<16x4xf32>
    %77 = vector.shape_cast %76 : vector<16x4xf32> to vector<2x8x4xf32>
    %c6 = arith.constant 6 : index
    %c0_44 = arith.constant 0 : index
    %c0_45 = arith.constant 0 : index
    %78 = vector.load %arg4[%c6, %c0_44, %c0_45] : memref<16x8x4xf32, #tpu.memory_space<vmem>>, vector<2x8x4xf32>
    tpu.vector_store %arg4[%c6, %c0_44, %c0_45], %77 {strides = array<i32>} : memref<16x8x4xf32, #tpu.memory_space<vmem>>, vector<2x8x4xf32>,
    %79 = vector.extract_strided_slice %48 {offsets = [0, 44], sizes = [16, 4], strides = [1, 1]} : vector<16x96xf32> to vector<16x4xf32>
    %80 = vector.shape_cast %79 : vector<16x4xf32> to vector<2x8x4xf32>
    %c6_46 = arith.constant 6 : index
    %c0_47 = arith.constant 0 : index
    %c0_48 = arith.constant 0 : index
    %81 = vector.load %arg5[%c6_46, %c0_47, %c0_48] : memref<16x8x4xf32, #tpu.memory_space<vmem>>, vector<2x8x4xf32>
    tpu.vector_store %arg5[%c6_46, %c0_47, %c0_48], %80 {strides = array<i32>} : memref<16x8x4xf32, #tpu.memory_space<vmem>>, vector<2x8x4xf32>,
    %82 = vector.extract_strided_slice %48 {offsets = [0, 76], sizes = [16, 4], strides = [1, 1]} : vector<16x96xf32> to vector<16x4xf32>
    %83 = vector.shape_cast %82 : vector<16x4xf32> to vector<2x8x4xf32>
    %c6_49 = arith.constant 6 : index
    %c0_50 = arith.constant 0 : index
    %c0_51 = arith.constant 0 : index
    %84 = vector.load %arg6[%c6_49, %c0_50, %c0_51] : memref<16x8x4xf32, #tpu.memory_space<vmem>>, vector<2x8x4xf32>
    tpu.vector_store %arg6[%c6_49, %c0_50, %c0_51], %83 {strides = array<i32>} : memref<16x8x4xf32, #tpu.memory_space<vmem>>, vector<2x8x4xf32>,
    %85 = vector.extract_strided_slice %48 {offsets = [0, 16], sizes = [16, 4], strides = [1, 1]} : vector<16x96xf32> to vector<16x4xf32>
    %86 = vector.shape_cast %85 : vector<16x4xf32> to vector<2x8x4xf32>
    %c8 = arith.constant 8 : index
    %c0_52 = arith.constant 0 : index
    %c0_53 = arith.constant 0 : index
    %87 = vector.load %arg4[%c8, %c0_52, %c0_53] : memref<16x8x4xf32, #tpu.memory_space<vmem>>, vector<2x8x4xf32>
    tpu.vector_store %arg4[%c8, %c0_52, %c0_53], %86 {strides = array<i32>} : memref<16x8x4xf32, #tpu.memory_space<vmem>>, vector<2x8x4xf32>,
    %88 = vector.extract_strided_slice %48 {offsets = [0, 48], sizes = [16, 4], strides = [1, 1]} : vector<16x96xf32> to vector<16x4xf32>
    %89 = vector.shape_cast %88 : vector<16x4xf32> to vector<2x8x4xf32>
    %c8_54 = arith.constant 8 : index
    %c0_55 = arith.constant 0 : index
    %c0_56 = arith.constant 0 : index
    %90 = vector.load %arg5[%c8_54, %c0_55, %c0_56] : memref<16x8x4xf32, #tpu.memory_space<vmem>>, vector<2x8x4xf32>
    tpu.vector_store %arg5[%c8_54, %c0_55, %c0_56], %89 {strides = array<i32>} : memref<16x8x4xf32, #tpu.memory_space<vmem>>, vector<2x8x4xf32>,
    %91 = vector.extract_strided_slice %48 {offsets = [0, 80], sizes = [16, 4], strides = [1, 1]} : vector<16x96xf32> to vector<16x4xf32>
    %92 = vector.shape_cast %91 : vector<16x4xf32> to vector<2x8x4xf32>
    %c8_57 = arith.constant 8 : index
    %c0_58 = arith.constant 0 : index
    %c0_59 = arith.constant 0 : index
    %93 = vector.load %arg6[%c8_57, %c0_58, %c0_59] : memref<16x8x4xf32, #tpu.memory_space<vmem>>, vector<2x8x4xf32>
    tpu.vector_store %arg6[%c8_57, %c0_58, %c0_59], %92 {strides = array<i32>} : memref<16x8x4xf32, #tpu.memory_space<vmem>>, vector<2x8x4xf32>,
    %94 = vector.extract_strided_slice %48 {offsets = [0, 20], sizes = [16, 4], strides = [1, 1]} : vector<16x96xf32> to vector<16x4xf32>
    %95 = vector.shape_cast %94 : vector<16x4xf32> to vector<2x8x4xf32>
    %c10 = arith.constant 10 : index
    %c0_60 = arith.constant 0 : index
    %c0_61 = arith.constant 0 : index
    %96 = vector.load %arg4[%c10, %c0_60, %c0_61] : memref<16x8x4xf32, #tpu.memory_space<vmem>>, vector<2x8x4xf32>
    tpu.vector_store %arg4[%c10, %c0_60, %c0_61], %95 {strides = array<i32>} : memref<16x8x4xf32, #tpu.memory_space<vmem>>, vector<2x8x4xf32>,
    %97 = vector.extract_strided_slice %48 {offsets = [0, 52], sizes = [16, 4], strides = [1, 1]} : vector<16x96xf32> to vector<16x4xf32>
    %98 = vector.shape_cast %97 : vector<16x4xf32> to vector<2x8x4xf32>
    %c10_62 = arith.constant 10 : index
    %c0_63 = arith.constant 0 : index
    %c0_64 = arith.constant 0 : index
    %99 = vector.load %arg5[%c10_62, %c0_63, %c0_64] : memref<16x8x4xf32, #tpu.memory_space<vmem>>, vector<2x8x4xf32>
    tpu.vector_store %arg5[%c10_62, %c0_63, %c0_64], %98 {strides = array<i32>} : memref<16x8x4xf32, #tpu.memory_space<vmem>>, vector<2x8x4xf32>,
    %100 = vector.extract_strided_slice %48 {offsets = [0, 84], sizes = [16, 4], strides = [1, 1]} : vector<16x96xf32> to vector<16x4xf32>
    %101 = vector.shape_cast %100 : vector<16x4xf32> to vector<2x8x4xf32>
    %c10_65 = arith.constant 10 : index
    %c0_66 = arith.constant 0 : index
    %c0_67 = arith.constant 0 : index
    %102 = vector.load %arg6[%c10_65, %c0_66, %c0_67] : memref<16x8x4xf32, #tpu.memory_space<vmem>>, vector<2x8x4xf32>
    tpu.vector_store %arg6[%c10_65, %c0_66, %c0_67], %101 {strides = array<i32>} : memref<16x8x4xf32, #tpu.memory_space<vmem>>, vector<2x8x4xf32>,
    %103 = vector.extract_strided_slice %48 {offsets = [0, 24], sizes = [16, 4], strides = [1, 1]} : vector<16x96xf32> to vector<16x4xf32>
    %104 = vector.shape_cast %103 : vector<16x4xf32> to vector<2x8x4xf32>
    %c12 = arith.constant 12 : index
    %c0_68 = arith.constant 0 : index
    %c0_69 = arith.constant 0 : index
    %105 = vector.load %arg4[%c12, %c0_68, %c0_69] : memref<16x8x4xf32, #tpu.memory_space<vmem>>, vector<2x8x4xf32>
    tpu.vector_store %arg4[%c12, %c0_68, %c0_69], %104 {strides = array<i32>} : memref<16x8x4xf32, #tpu.memory_space<vmem>>, vector<2x8x4xf32>,
    %106 = vector.extract_strided_slice %48 {offsets = [0, 56], sizes = [16, 4], strides = [1, 1]} : vector<16x96xf32> to vector<16x4xf32>
    %107 = vector.shape_cast %106 : vector<16x4xf32> to vector<2x8x4xf32>
    %c12_70 = arith.constant 12 : index
    %c0_71 = arith.constant 0 : index
    %c0_72 = arith.constant 0 : index
    %108 = vector.load %arg5[%c12_70, %c0_71, %c0_72] : memref<16x8x4xf32, #tpu.memory_space<vmem>>, vector<2x8x4xf32>
    tpu.vector_store %arg5[%c12_70, %c0_71, %c0_72], %107 {strides = array<i32>} : memref<16x8x4xf32, #tpu.memory_space<vmem>>, vector<2x8x4xf32>,
    %109 = vector.extract_strided_slice %48 {offsets = [0, 88], sizes = [16, 4], strides = [1, 1]} : vector<16x96xf32> to vector<16x4xf32>
    %110 = vector.shape_cast %109 : vector<16x4xf32> to vector<2x8x4xf32>
    %c12_73 = arith.constant 12 : index
    %c0_74 = arith.constant 0 : index
    %c0_75 = arith.constant 0 : index
    %111 = vector.load %arg6[%c12_73, %c0_74, %c0_75] : memref<16x8x4xf32, #tpu.memory_space<vmem>>, vector<2x8x4xf32>
    tpu.vector_store %arg6[%c12_73, %c0_74, %c0_75], %110 {strides = array<i32>} : memref<16x8x4xf32, #tpu.memory_space<vmem>>, vector<2x8x4xf32>,
    %112 = vector.extract_strided_slice %48 {offsets = [0, 28], sizes = [16, 4], strides = [1, 1]} : vector<16x96xf32> to vector<16x4xf32>
    %113 = vector.shape_cast %112 : vector<16x4xf32> to vector<2x8x4xf32>
    %c14 = arith.constant 14 : index
    %c0_76 = arith.constant 0 : index
    %c0_77 = arith.constant 0 : index
    %114 = vector.load %arg4[%c14, %c0_76, %c0_77] : memref<16x8x4xf32, #tpu.memory_space<vmem>>, vector<2x8x4xf32>
    tpu.vector_store %arg4[%c14, %c0_76, %c0_77], %113 {strides = array<i32>} : memref<16x8x4xf32, #tpu.memory_space<vmem>>, vector<2x8x4xf32>,
    %115 = vector.extract_strided_slice %48 {offsets = [0, 60], sizes = [16, 4], strides = [1, 1]} : vector<16x96xf32> to vector<16x4xf32>
    %116 = vector.shape_cast %115 : vector<16x4xf32> to vector<2x8x4xf32>
    %c14_78 = arith.constant 14 : index
    %c0_79 = arith.constant 0 : index
    %c0_80 = arith.constant 0 : index
    %117 = vector.load %arg5[%c14_78, %c0_79, %c0_80] : memref<16x8x4xf32, #tpu.memory_space<vmem>>, vector<2x8x4xf32>
    tpu.vector_store %arg5[%c14_78, %c0_79, %c0_80], %116 {strides = array<i32>} : memref<16x8x4xf32, #tpu.memory_space<vmem>>, vector<2x8x4xf32>,
    %118 = vector.extract_strided_slice %48 {offsets = [0, 92], sizes = [16, 4], strides = [1, 1]} : vector<16x96xf32> to vector<16x4xf32>
    %119 = vector.shape_cast %118 : vector<16x4xf32> to vector<2x8x4xf32>
    %c14_81 = arith.constant 14 : index
    %c0_82 = arith.constant 0 : index
    %c0_83 = arith.constant 0 : index
    %120 = vector.load %arg6[%c14_81, %c0_82, %c0_83] : memref<16x8x4xf32, #tpu.memory_space<vmem>>, vector<2x8x4xf32>
    tpu.vector_store %arg6[%c14_81, %c0_82, %c0_83], %119 {strides = array<i32>} : memref<16x8x4xf32, #tpu.memory_space<vmem>>, vector<2x8x4xf32>,
    %c160 = arith.constant 160 : index
    %c0_84 = arith.constant 0 : index
    %121 = vector.load %arg1[%c160, %c0_84] : memref<288x128xf32, #tpu.memory_space<vmem>>, vector<128x8xf32>
    %122 = vector.shape_cast %121 : vector<128x8xf32> to vector<16x8x8xf32>
    %c0_85 = arith.constant 0 : index
    %c0_86 = arith.constant 0 : index
    %c0_87 = arith.constant 0 : index
    %123 = vector.load %arg4[%c0_85, %c0_86, %c0_87] : memref<16x8x4xf32, #tpu.memory_space<vmem>>, vector<16x8x4xf32>
    %c0_88 = arith.constant 0 : index
    %c0_89 = arith.constant 0 : index
    %c0_90 = arith.constant 0 : index
    %124 = vector.load %arg5[%c0_88, %c0_89, %c0_90] : memref<16x8x4xf32, #tpu.memory_space<vmem>>, vector<16x8x4xf32>
    "tpu.trace_start"() <{level = 10 : i32, message = "znd,zmd->znm"}> : () -> ()
    %cst_91 = arith.constant dense<0.000000e+00> : vector<16x8x8xf32>
    %125 = tpu.matmul %123, %124, %cst_91 {dimension_numbers = #tpu.dot_dimension_numbers<[2], [2], [1], [1], [0, 0, 0, 1, 1, 1], [0], [0]>} : vector<16x8x4xf32>, vector<16x8x4xf32>, vector<16x8x8xf32> -> vector<16x8x8xf32>
    "tpu.trace_stop"() : () -> ()
    %126 = arith.addf %125, %122 : vector<16x8x8xf32>
    %cst_92 = arith.constant dense<0xFF800000> : vector<16x8xf32>
    %127 = vector.multi_reduction <maximumf>, %126, %cst_92 [2] : vector<16x8x8xf32> to vector<16x8xf32>
    %128 = vector.shape_cast %127 : vector<16x8xf32> to vector<16x8x1xf32>
    %129 = vector.broadcast %128 : vector<16x8x1xf32> to vector<16x8x8xf32>
    %130 = arith.subf %126, %129 : vector<16x8x8xf32>
    %131 = math.exp %130 : vector<16x8x8xf32>
    %cst_93 = arith.constant dense<0.000000e+00> : vector<16x8xf32>
    %132 = vector.multi_reduction <add>, %131, %cst_93 [2] : vector<16x8x8xf32> to vector<16x8xf32>
    %133 = vector.shape_cast %132 : vector<16x8xf32> to vector<16x8x1xf32>
    %134 = tpu.reciprocal %133 {approx = true} : vector<16x8x1xf32> -> vector<16x8x1xf32>
    %135 = vector.broadcast %134 : vector<16x8x1xf32> to vector<16x8x8xf32>
    %136 = arith.mulf %131, %135 : vector<16x8x8xf32>
    %c0_94 = arith.constant 0 : index
    %c0_95 = arith.constant 0 : index
    %c0_96 = arith.constant 0 : index
    %137 = vector.load %arg6[%c0_94, %c0_95, %c0_96] : memref<16x8x4xf32, #tpu.memory_space<vmem>>, vector<16x8x4xf32>
    "tpu.trace_start"() <{level = 10 : i32, message = "znm,zmd->znd"}> : () -> ()
    %cst_97 = arith.constant dense<0.000000e+00> : vector<16x8x4xf32>
    %138 = tpu.matmul %136, %137, %cst_97 {dimension_numbers = #tpu.dot_dimension_numbers<[2], [1], [1], [2], [0, 0, 0, 1, 1, 2], [0], [0]>} : vector<16x8x8xf32>, vector<16x8x4xf32>, vector<16x8x4xf32> -> vector<16x8x4xf32>
    "tpu.trace_stop"() : () -> ()
    %139 = vector.extract_strided_slice %138 {offsets = [0, 0, 0], sizes = [2, 8, 4], strides = [1, 1, 1]} : vector<16x8x4xf32> to vector<2x8x4xf32>
    %140 = vector.shape_cast %139 : vector<2x8x4xf32> to vector<16x4xf32>
    %c0_98 = arith.constant 0 : index
    %c0_99 = arith.constant 0 : index
    %141 = vector.load %arg7[%c0_98, %c0_99] : memref<16x32xf32, #tpu.memory_space<vmem>>, vector<16x4xf32>
    tpu.vector_store %arg7[%c0_98, %c0_99], %140 {strides = array<i32>} : memref<16x32xf32, #tpu.memory_space<vmem>>, vector<16x4xf32>,
    %142 = vector.extract_strided_slice %138 {offsets = [2, 0, 0], sizes = [2, 8, 4], strides = [1, 1, 1]} : vector<16x8x4xf32> to vector<2x8x4xf32>
    %143 = vector.shape_cast %142 : vector<2x8x4xf32> to vector<16x4xf32>
    %c0_100 = arith.constant 0 : index
    %c4_101 = arith.constant 4 : index
    %144 = vector.load %arg7[%c0_100, %c4_101] : memref<16x32xf32, #tpu.memory_space<vmem>>, vector<16x4xf32>
    tpu.vector_store %arg7[%c0_100, %c4_101], %143 {strides = array<i32>} : memref<16x32xf32, #tpu.memory_space<vmem>>, vector<16x4xf32>,
    %145 = vector.extract_strided_slice %138 {offsets = [4, 0, 0], sizes = [2, 8, 4], strides = [1, 1, 1]} : vector<16x8x4xf32> to vector<2x8x4xf32>
    %146 = vector.shape_cast %145 : vector<2x8x4xf32> to vector<16x4xf32>
    %c0_102 = arith.constant 0 : index
    %c8_103 = arith.constant 8 : index
    %147 = vector.load %arg7[%c0_102, %c8_103] : memref<16x32xf32, #tpu.memory_space<vmem>>, vector<16x4xf32>
    tpu.vector_store %arg7[%c0_102, %c8_103], %146 {strides = array<i32>} : memref<16x32xf32, #tpu.memory_space<vmem>>, vector<16x4xf32>,
    %148 = vector.extract_strided_slice %138 {offsets = [6, 0, 0], sizes = [2, 8, 4], strides = [1, 1, 1]} : vector<16x8x4xf32> to vector<2x8x4xf32>
    %149 = vector.shape_cast %148 : vector<2x8x4xf32> to vector<16x4xf32>
    %c0_104 = arith.constant 0 : index
    %c12_105 = arith.constant 12 : index
    %150 = vector.load %arg7[%c0_104, %c12_105] : memref<16x32xf32, #tpu.memory_space<vmem>>, vector<16x4xf32>
    tpu.vector_store %arg7[%c0_104, %c12_105], %149 {strides = array<i32>} : memref<16x32xf32, #tpu.memory_space<vmem>>, vector<16x4xf32>,
    %151 = vector.extract_strided_slice %138 {offsets = [8, 0, 0], sizes = [2, 8, 4], strides = [1, 1, 1]} : vector<16x8x4xf32> to vector<2x8x4xf32>
    %152 = vector.shape_cast %151 : vector<2x8x4xf32> to vector<16x4xf32>
    %c0_106 = arith.constant 0 : index
    %c16_107 = arith.constant 16 : index
    %153 = vector.load %arg7[%c0_106, %c16_107] : memref<16x32xf32, #tpu.memory_space<vmem>>, vector<16x4xf32>
    tpu.vector_store %arg7[%c0_106, %c16_107], %152 {strides = array<i32>} : memref<16x32xf32, #tpu.memory_space<vmem>>, vector<16x4xf32>,
    %154 = vector.extract_strided_slice %138 {offsets = [10, 0, 0], sizes = [2, 8, 4], strides = [1, 1, 1]} : vector<16x8x4xf32> to vector<2x8x4xf32>
    %155 = vector.shape_cast %154 : vector<2x8x4xf32> to vector<16x4xf32>
    %c0_108 = arith.constant 0 : index
    %c20 = arith.constant 20 : index
    %156 = vector.load %arg7[%c0_108, %c20] : memref<16x32xf32, #tpu.memory_space<vmem>>, vector<16x4xf32>
    tpu.vector_store %arg7[%c0_108, %c20], %155 {strides = array<i32>} : memref<16x32xf32, #tpu.memory_space<vmem>>, vector<16x4xf32>,
    %157 = vector.extract_strided_slice %138 {offsets = [12, 0, 0], sizes = [2, 8, 4], strides = [1, 1, 1]} : vector<16x8x4xf32> to vector<2x8x4xf32>
    %158 = vector.shape_cast %157 : vector<2x8x4xf32> to vector<16x4xf32>
    %c0_109 = arith.constant 0 : index
    %c24 = arith.constant 24 : index
    %159 = vector.load %arg7[%c0_109, %c24] : memref<16x32xf32, #tpu.memory_space<vmem>>, vector<16x4xf32>
    tpu.vector_store %arg7[%c0_109, %c24], %158 {strides = array<i32>} : memref<16x32xf32, #tpu.memory_space<vmem>>, vector<16x4xf32>,
    %160 = vector.extract_strided_slice %138 {offsets = [14, 0, 0], sizes = [2, 8, 4], strides = [1, 1, 1]} : vector<16x8x4xf32> to vector<2x8x4xf32>
    %161 = vector.shape_cast %160 : vector<2x8x4xf32> to vector<16x4xf32>
    %c0_110 = arith.constant 0 : index
    %c28 = arith.constant 28 : index
    %162 = vector.load %arg7[%c0_110, %c28] : memref<16x32xf32, #tpu.memory_space<vmem>>, vector<16x4xf32>
    tpu.vector_store %arg7[%c0_110, %c28], %161 {strides = array<i32>} : memref<16x32xf32, #tpu.memory_space<vmem>>, vector<16x4xf32>,
    %c64 = arith.constant 64 : index
    %c0_111 = arith.constant 0 : index
    %163 = vector.load %arg2[%c64, %c0_111] : memref<224x128xf32, #tpu.memory_space<vmem>>, vector<32x32xf32>
    %c0_112 = arith.constant 0 : index
    %c0_113 = arith.constant 0 : index
    %164 = vector.load %arg7[%c0_112, %c0_113] : memref<16x32xf32, #tpu.memory_space<vmem>>, vector<16x32xf32>
    %cst_114 = arith.constant dense<0.000000e+00> : vector<16x32xf32>
    %165 = tpu.matmul %164, %163, %cst_114 {dimension_numbers = #tpu.dot_dimension_numbers<[1], [0], [0], [1], [0, 0, 1, 1], [], []>} : vector<16x32xf32>, vector<32x32xf32>, vector<16x32xf32> -> vector<16x32xf32>
    %166 = arith.addf %0, %165 : vector<16x32xf32>
    %c96 = arith.constant 96 : index
    %c0_115 = arith.constant 0 : index
    %167 = vector.load %arg1[%c96, %c0_115] : memref<288x128xf32, #tpu.memory_space<vmem>>, vector<16x32xf32>
    %168 = arith.addf %166, %167 : vector<16x32xf32>
    %cst_116 = arith.constant dense<0.000000e+00> : vector<16xf32>
    %169 = vector.multi_reduction <add>, %168, %cst_116 [1] : vector<16x32xf32> to vector<16xf32>
    %170 = vector.shape_cast %169 : vector<16xf32> to vector<16x1xf32>
    %cst_117 = arith.constant 3.200000e+01 : f32
    %171 = vector.broadcast %cst_117 : f32 to vector<16x1xf32>
    %172 = arith.divf %170, %171 : vector<16x1xf32>
    %173 = arith.mulf %168, %168 : vector<16x32xf32>
    %cst_118 = arith.constant dense<0.000000e+00> : vector<16xf32>
    %174 = vector.multi_reduction <add>, %173, %cst_118 [1] : vector<16x32xf32> to vector<16xf32>
    %175 = vector.shape_cast %174 : vector<16xf32> to vector<16x1xf32>
    %cst_119 = arith.constant 3.200000e+01 : f32
    %176 = vector.broadcast %cst_119 : f32 to vector<16x1xf32>
    %177 = arith.divf %175, %176 : vector<16x1xf32>
    %178 = arith.mulf %172, %172 : vector<16x1xf32>
    %179 = arith.subf %177, %178 : vector<16x1xf32>
    %180 = vector.broadcast %172 : vector<16x1xf32> to vector<16x32xf32>
    %181 = arith.subf %168, %180 : vector<16x32xf32>
    %cst_120 = arith.constant 9.99999974E-6 : f32
    %182 = vector.broadcast %cst_120 : f32 to vector<16x1xf32>
    %183 = arith.addf %179, %182 : vector<16x1xf32>
    %184 = math.rsqrt %183 : vector<16x1xf32>
    %185 = vector.broadcast %184 : vector<16x1xf32> to vector<16x32xf32>
    %186 = arith.mulf %181, %185 : vector<16x32xf32>
    %c64_121 = arith.constant 64 : index
    %c0_122 = arith.constant 0 : index
    %187 = vector.load %arg1[%c64_121, %c0_122] : memref<288x128xf32, #tpu.memory_space<vmem>>, vector<16x32xf32>
    %188 = arith.mulf %186, %187 : vector<16x32xf32>
    %c80 = arith.constant 80 : index
    %c0_123 = arith.constant 0 : index
    %189 = vector.load %arg1[%c80, %c0_123] : memref<288x128xf32, #tpu.memory_space<vmem>>, vector<16x32xf32>
    %190 = arith.addf %188, %189 : vector<16x32xf32>
    %c32_124 = arith.constant 32 : index
    %c0_125 = arith.constant 0 : index
    %191 = vector.load %arg2[%c32_124, %c0_125] : memref<224x128xf32, #tpu.memory_space<vmem>>, vector<32x128xf32>
    %cst_126 = arith.constant dense<0.000000e+00> : vector<16x128xf32>
    %192 = tpu.matmul %190, %191, %cst_126 {dimension_numbers = #tpu.dot_dimension_numbers<[1], [0], [0], [1], [0, 0, 1, 1], [], []>} : vector<16x32xf32>, vector<32x128xf32>, vector<16x128xf32> -> vector<16x128xf32>
    %c144 = arith.constant 144 : index
    %c0_127 = arith.constant 0 : index
    %193 = vector.load %arg1[%c144, %c0_127] : memref<288x128xf32, #tpu.memory_space<vmem>>, vector<16x128xf32>
    %194 = arith.addf %192, %193 : vector<16x128xf32>
    %cst_128 = arith.constant 5.000000e-01 : f32
    %195 = vector.broadcast %cst_128 : f32 to vector<16x128xf32>
    %196 = arith.mulf %195, %194 : vector<16x128xf32>
    %cst_129 = arith.constant 0.707106769 : f32
    %197 = vector.broadcast %cst_129 : f32 to vector<16x128xf32>
    %198 = arith.mulf %194, %197 : vector<16x128xf32>
    %199 = math.erf %198 : vector<16x128xf32>
    %cst_130 = arith.constant 1.000000e+00 : f32
    %200 = vector.broadcast %cst_130 : f32 to vector<16x128xf32>
    %201 = arith.addf %200, %199 : vector<16x128xf32>
    %202 = arith.mulf %196, %201 : vector<16x128xf32>
    %c96_131 = arith.constant 96 : index
    %c0_132 = arith.constant 0 : index
    %203 = vector.load %arg2[%c96_131, %c0_132] : memref<224x128xf32, #tpu.memory_space<vmem>>, vector<128x32xf32>
    %cst_133 = arith.constant dense<0.000000e+00> : vector<16x32xf32>
    %204 = tpu.matmul %202, %203, %cst_133 {dimension_numbers = #tpu.dot_dimension_numbers<[1], [0], [0], [1], [0, 0, 1, 1], [], []>} : vector<16x128xf32>, vector<128x32xf32>, vector<16x32xf32> -> vector<16x32xf32>
    %c112 = arith.constant 112 : index
    %c0_134 = arith.constant 0 : index
    %205 = vector.load %arg1[%c112, %c0_134] : memref<288x128xf32, #tpu.memory_space<vmem>>, vector<16x32xf32>
    %206 = arith.addf %204, %205 : vector<16x32xf32>
    %207 = arith.addf %168, %206 : vector<16x32xf32>
    %c0_135 = arith.constant 0 : index
    %c0_136 = arith.constant 0 : index
    %208 = vector.load %arg3[%c0_135, %c0_136] : memref<16x32xf32, #tpu.memory_space<vmem>>, vector<16x32xf32>
    tpu.vector_store %arg3[%c0_135, %c0_136], %207 {strides = array<i32>} : memref<16x32xf32, #tpu.memory_space<vmem>>, vector<16x32xf32>,
    return
  }
}

</mosaic_0001>

<bundles_post_ra>
// kernel: transformer_block.1
= control target key start
LH: loop header
LB: loop body
LE: loop exit
PB: predicated region body
PF: predicated region fallthrough
CT: control target
= control target key end

     0   :  { %8 = vsyncpa [#allocation7], 0  ;;  %s4697_s0 = inlined_call_operand.hbm [shape: f32[16,32], index: 0, kind: input, shape index: {}]   ;;  %s4698_s1 = inlined_call_operand.hbm [shape: f32[288,128], index: 1, kind: input, shape index: {}]   ;;  %s4699_s2 = inlined_call_operand.hbm [shape: f32[224,128], index: 2, kind: input, shape index: {}]   ;;  %s4700_s3 = inlined_call_operand.hbm [shape: f32[16,32], index: 3, kind: output, shape index: {}]  }
   0x1   :  { %9 = vsyncpa [#allocation10], 0 }
   0x2   :  { %10 = vsyncpa [#allocation8], 0  ;;  %s4131_s12 = smov [#allocation9]   ;;  %s4132_s14 = smov [#allocation6]  }
   0x3   :  { %s28_s13 = sshll.u32 %s4131_s12, 4  ;;  %s16_s15 = sshll.u32 %s4132_s14, 4  ;;  %s29_s13 = int_to_ptr.vmem [resolvable:$true] %s28_s13  ;;  %s4188_s15 = int_to_ptr.vmem [resolvable:$true] %s16_s15 }
   0x4   :  { %s4037_s18 = scalar_lea.hbm %s4698_s1, 4608 }
   0x5   :  { %p4038_p0 = scmp.ne.s32.totalorder %s4698_s1, %s4037_s18  ;;  %p4041_p1 = scmp.lt.u32.totalorder %s4037_s18, %s4698_s1 }
   0x7   :  { %p4043_p2 = pnand %p4041_p1, %p4038_p0 }
   0x9   :  { %4046 = shalt.err (!%p4043_p2)
}
   0xa   :  { %s4047_s23 = scalar_lea.vmem %s29_s13, 4608  ;;  %p4052_p4 = scmp.lt.s32.totalorder %s29_s13, %s29_s13 }
   0xb   :  { %p4048_p3 = scmp.ne.s32.totalorder %s29_s13, %s4047_s23  ;;  %p4053_p5 = scmp.lt.s32.totalorder %s4047_s23, %s4047_s23 }
   0xd   :  { %p4054_p6 = por %p4053_p5, %p4052_p4 }
   0xf   :  { %p4055_p7 = pnand %p4054_p6, %p4048_p3 }
  0x11   :  { %4058 = shalt.err (!%p4055_p7)
}
  0x12   :  { %s4133_s24 = smov 128   ;;  %s4134_s25 = smov 8  }
  0x13   :  { %34 = dma.hbm_to_vmem [thread:$0]  %s4698_s1, 4608, %s29_s13, [#allocation10], %s4133_s24, %s4133_s24, %s4134_s25  }
  0x14   :  { %s4059_s30 = scalar_lea.hbm %s4697_s0, 256 }
  0x15   :  { %p4060_p8 = scmp.ne.s32.totalorder %s4697_s0, %s4059_s30  ;;  %p4063_p9 = scmp.lt.u32.totalorder %s4059_s30, %s4697_s0 }
  0x17   :  { %p4065_p10 = pnand %p4063_p9, %p4060_p8 }
  0x19   :  { %4068 = shalt.err (!%p4065_p10)
}
  0x1a   :  { %s4069_s8 = scalar_lea.vmem %s4188_s15, 256  ;;  %p4074_p12 = scmp.lt.s32.totalorder %s4188_s15, %s4188_s15 }
  0x1b   :  { %p4070_p11 = scmp.ne.s32.totalorder %s4188_s15, %s4069_s8  ;;  %p4075_p13 = scmp.lt.s32.totalorder %s4069_s8, %s4069_s8 }
  0x1d   :  { %p4076_p0 = por %p4075_p13, %p4074_p12 }
  0x1f   :  { %p4077_p1 = pnand %p4076_p0, %p4070_p11 }
  0x21   :  { %4080 = shalt.err (!%p4077_p1)
}
  0x22   :  { %22 = dma.hbm_to_vmem [thread:$0]  %s4697_s0, 256, %s4188_s15, [#allocation7], %s4133_s24, %s4133_s24, %s4134_s25  }
  0x23   :  { %s4135_s10 = smov [#allocation11]   ;;  %s4081_s14 = scalar_lea.hbm %s4699_s2, 3584 }
  0x24   :  { %s40_s11 = sshll.u32 %s4135_s10, 4  ;;  %p4082_p2 = scmp.ne.s32.totalorder %s4699_s2, %s4081_s14  ;;  %s41_s11 = int_to_ptr.vmem [resolvable:$true] %s40_s11 }
  0x25   :  { %p4085_p3 = scmp.lt.u32.totalorder %s4081_s14, %s4699_s2 }
  0x27   :  { %p4087_p4 = pnand %p4085_p3, %p4082_p2 }
  0x29   :  { %4090 = shalt.err (!%p4087_p4)
}
  0x2a   :  { %s4091_s20 = scalar_lea.vmem %s41_s11, 3584  ;;  %p4096_p6 = scmp.lt.s32.totalorder %s41_s11, %s41_s11 }
  0x2b   :  { %p4092_p5 = scmp.ne.s32.totalorder %s41_s11, %s4091_s20  ;;  %p4097_p7 = scmp.lt.s32.totalorder %s4091_s20, %s4091_s20 }
  0x2d   :  { %p4098_p8 = por %p4097_p7, %p4096_p6 }
  0x2f   :  { %p4099_p9 = pnand %p4098_p8, %p4092_p5 }
  0x31   :  { %4102 = shalt.err (!%p4099_p9)
}
  0x32   :  { %46 = dma.hbm_to_vmem [thread:$0]  %s4699_s2, 3584, %s41_s11, [#allocation10], %s4133_s24, %s4133_s24, %s4134_s25  }
  0x33   :  { %4125 = dma.done.wait [#allocation7], 256  }
  0x34   :  { %4126 = vsyncadd [#allocation7], 4294967040 }
  0x35   :  { %4127 = dma.done.wait [#allocation10], 8192  }
  0x36   :  { %4128 = vsyncadd [#allocation10], 4294959104  ;;  %vm58_vm0 = vcmask 261120   ;;  %v56_v0 = vld [vmem:[#allocation6] sm:$0xff]  ;;  %v57_v1 = vld [vmem:[#allocation6 + $0x8] sm:$0xff]  ;;  %vm223_vm1 = vcmask 31744  }
  0x37   :  { %v59_v2 = vsel %vm58_vm0, %v56_v0, 0.0  ;;  %v68_v3 = vmul.f32 %v56_v0, %v56_v0  ;;  %v69_v4 = vmul.f32 %v57_v1, %v57_v1  ;;  %v62_v6 = vsel %vm58_vm0, %v57_v1, 0.0  ;;  %v90_v24 = vld [vmem:[#allocation9] sm:$0xff]  ;;  %v94_v26 = vld [vmem:[#allocation9 + $0x10] sm:$0xff]  ;;  %v91_v30 = vld [vmem:[#allocation9 + $0x8] sm:$0xff]  ;;  %s4138_s2 = smov 96  }
  0x38   :  { %60 = vadd.xlane.f32.xlu0 %v59_v2  ;;  %v95_v33 = vld [vmem:[#allocation9 + $0x18] sm:$0xff]  ;;  %v136_v42 = vld [vmem:[#allocation11] sm:$0xff]  ;;  %v137_v43 = vld [vmem:[#allocation11 + $0x8] sm:$0xff]  ;;  %vm4137_vm2 = vmmov 0   ;;  %s4139_s21 = smov 92   ;;  %s4140_s22 = smov 124  }
  0x39   :  { %v70_v5 = vsel %vm58_vm0, %v68_v3, 0.0  ;;  %v73_v7 = vsel %vm58_vm0, %v69_v4, 0.0  ;;  %v138_v44 = vld [vmem:[#allocation11 + $0x10] sm:$0xff]  ;;  %v3862_v45 = vpack.c.bf16 %v137_v43, %v136_v42  ;;  %v139_v46 = vld [vmem:[#allocation11 + $0x18] sm:$0xff]  ;;  %s4141_s23 = smov 88   ;;  %s4142_s26 = smov 120  }
  0x3a   :  { %71 = vadd.xlane.f32.xlu1 %v70_v5  ;;  %v3866_v47 = vpack.c.bf16 %v139_v46, %v138_v44  ;;  %v132_v2 = vld [vmem:[#allocation9 + $0x30] sm:$0xff]  ;;  %s4143_s27 = smov 84   ;;  %s4144_s28 = smov 116   ;;  %vm1697_vm3 = vcmask 64512   ;;  %vm3068_vm4 = vcmask 64544   ;;  %vm3079_vm5 = vcmask 97344  }
  0x3b   :  { %3863 = vmatprep.subr.bf16.mxu1 %v3862_v45  ;;  %s4145_s29 = smov 80   ;;  %s4146_s30 = smov 112   ;;  %vm3090_vm6 = vcmask 130144   ;;  %vm3101_vm7 = vcmask 162944   ;;  %vm3112_vm8 = vcmask 195744   ;;  %vm3123_vm9 = vcmask 228544  }
  0x3c   :  { %63 = vadd.xlane.f32.xlu0 %v62_v6  ;;  %3865 = vmatpush3.bf16.msra.mxu1 %v3862_v45  ;;  %v129_v6 = vld [vmem:[#allocation9 + $0x28] sm:$0xff]  ;;  %s4147_s4 = smov 76   ;;  %s4148_s5 = smov 108   ;;  %vm3134_vm10 = vcmask 261344  }
  0x3d   :  { %3867 = vmatprep.subr.bf16.mxu1 %v3866_v47  ;;  %s4149_s6 = smov 72   ;;  %s4150_s7 = smov 104  }
  0x3e   :  { %74 = vadd.xlane.f32.xlu1 %v73_v7  ;;  %s4151_s8 = smov 68   ;;  %s4152_s1 = smov 100  }
  0x3f   :  { %s4153_s9 = smov 64   ;;  %s4154_s10 = smov 60  }
  0x40   :  { %3869 = vmatpush3.bf16.msra.mxu1 %v3866_v47  ;;  %s4155_s11 = smov 56   ;;  %s4156_s12 = smov 52  }
  0x41   :  { %s4157_s13 = smov 44   ;;  %s4158_s14 = smov 48  }
  0x42   :  { %s4159_s16 = smov 40   ;;  %s4160_s17 = smov 36  }
  0x43   :  { %s4161_s18 = smov 4   ;;  %s4162_s19 = smov 12  }
  0x44   :  { %s4163_s20 = smov 16   ;;  %s4164_s0 = smov 20  }
  0x45   :  { %s4165_s15 = smov 24  }
  0xc5   :  { %v61_v8 = vpop.xlane.xlu0 %60 }
  0xc6   :  { %v66_v9 = vmul.f32 0.03125, %v61_v8 }
  0xc7   :  { %v72_v10 = vpop.xlane.xlu1 %71 }
  0xc8   :  { %v78_v11 = vmul.f32 %v66_v9, %v66_v9  ;;  %v76_v12 = vmul.f32 0.03125, %v72_v10  ;;  %v82_v22 = vsub.f32 %v56_v0, %v66_v9  ;;  %v128_v0 = vld [vmem:[#allocation9 + $0x20] sm:$0xff]  ;;  %v133_v9 = vld [vmem:[#allocation9 + $0x38] sm:$0xff] }
  0xc9   :  { %v64_v13 = vpop.xlane.xlu0 %63 }
  0xca   :  { %v80_v14 = vsub.f32 %v76_v12, %v78_v11  ;;  %v67_v15 = vmul.f32 0.03125, %v64_v13  ;;  %v141_v12 = vld [vmem:[#allocation9 + $0x88] sm:$0xff]  ;;  %v4136_v13 = vmov 0.0  }
  0xcb   :  { %v75_v16 = vpop.xlane.xlu1 %74  ;;  %3645 = vmatprep.subr.mxu1 %v4136_v13  ;;  %3655 = vmatprep.subr.mxu0 %v4136_v13 }
  0xcc   :  { %v84_v17 = vadd.f32 1e-05, %v80_v14  ;;  %v79_v18 = vmul.f32 %v67_v15, %v67_v15  ;;  %v77_v19 = vmul.f32 0.03125, %v75_v16  ;;  %v83_v27 = vsub.f32 %v57_v1, %v67_v15  ;;  %v140_v14 = vld [vmem:[#allocation9 + $0x80] sm:$0xff]  ;;  %3657 = vmatprep.mubr.msk.f32.mxu0 %vm4137_vm2, %v4136_v13 }
  0xce   :  { %3955 = vrsqrt.f32 %v84_v17  ;;  %v81_v20 = vsub.f32 %v77_v19, %v79_v18 }
  0xd0   :  { %v85_v21 = vadd.f32 1e-05, %v81_v20 }
  0xd2   :  { %3957 = vrsqrt.f32 %v85_v21 }
  0xd8   :  { %v3956_v23 = vpop.eup %3955 }
  0xd9   :  { %v88_v25 = vmul.f32 %v3956_v23, %v82_v22 }
  0xdb   :  { %v92_v28 = vmul.f32 %v90_v24, %v88_v25 }
  0xdc   :  { %v3958_v29 = vpop.eup %3957 }
  0xdd   :  { %v96_v31 = vadd.f32 %v94_v26, %v92_v28  ;;  %v89_v32 = vmul.f32 %v3958_v29, %v83_v27 }
  0xdf   :  { %v98_v34 = vsel %vm58_vm0, %v96_v31, 0.0  ;;  %v106_v35 = vmul.f32 %v96_v31, %v96_v31  ;;  %v93_v36 = vmul.f32 %v91_v30, %v89_v32 }
  0xe0   :  { %99 = vadd.xlane.f32.xlu0 %v98_v34 }
  0xe1   :  { %v97_v37 = vadd.f32 %v95_v33, %v93_v36  ;;  %v108_v38 = vsel %vm58_vm0, %v106_v35, 0.0 }
  0xe3   :  { %v101_v39 = vsel %vm58_vm0, %v97_v37, 0.0  ;;  %v107_v40 = vmul.f32 %v97_v37, %v97_v37 }
  0xe4   :  { %109 = vadd.xlane.f32.xlu0 %v108_v38  ;;  %102 = vadd.xlane.f32.xlu1 %v101_v39 }
  0xe5   :  { %v111_v41 = vsel %vm58_vm0, %v107_v40, 0.0 }
  0xe8   :  { %112 = vadd.xlane.f32.xlu1 %v111_v41 }
 0x16d   :  { %v100_v48 = vpop.xlane.xlu0 %99 }
 0x16e   :  { %v104_v49 = vmul.f32 0.03125, %v100_v48 }
 0x170   :  { %v116_v52 = vmul.f32 %v104_v49, %v104_v49  ;;  %v120_v62 = vsub.f32 %v96_v31, %v104_v49 }
 0x171   :  { %v103_v50 = vpop.xlane.xlu1 %102  ;;  %v110_v51 = vpop.xlane.xlu0 %109 }
 0x172   :  { %v105_v53 = vmul.f32 0.03125, %v103_v50  ;;  %v114_v54 = vmul.f32 0.03125, %v110_v51 }
 0x174   :  { %v118_v55 = vsub.f32 %v114_v54, %v116_v52  ;;  %v117_v57 = vmul.f32 %v105_v53, %v105_v53  ;;  %v121_v3 = vsub.f32 %v97_v37, %v105_v53 }
 0x175   :  { %v113_v56 = vpop.xlane.xlu1 %112 }
 0x176   :  { %v122_v58 = vadd.f32 1e-05, %v118_v55  ;;  %v115_v59 = vmul.f32 0.03125, %v113_v56 }
 0x178   :  { %3959 = vrsqrt.f32 %v122_v58  ;;  %v119_v60 = vsub.f32 %v115_v59, %v117_v57 }
 0x17a   :  { %v123_v61 = vadd.f32 1e-05, %v119_v60 }
 0x17c   :  { %3961 = vrsqrt.f32 %v123_v61 }
 0x182   :  { %v3960_v63 = vpop.eup %3959 }
 0x183   :  { %v126_v1 = vmul.f32 %v3960_v63, %v120_v62 }
 0x185   :  { %v130_v4 = vmul.f32 %v128_v0, %v126_v1 }
 0x186   :  { %v3962_v5 = vpop.eup %3961 }
 0x187   :  { %v134_v7 = vadd.f32 %v132_v2, %v130_v4  ;;  %v127_v8 = vmul.f32 %v3962_v5, %v121_v3 }
 0x189   :  { %3642 = vmatprep.mubr.msk.f32.mxu1 %vm58_vm0, %v134_v7  ;;  %v131_v10 = vmul.f32 %v129_v6, %v127_v8 }
 0x18b   :  { %v135_v11 = vadd.f32 %v133_v9, %v131_v10 }
 0x18d   :  { %3643 = vmatmul.mubr.msk.f32.vlgmr.msra.gmra.mrb[0].mxu1 %vm58_vm0, %v135_v11 }
 0x18e   :  { %3647 = vmatprep.mubr.msk.f32.mxu1 %vm4137_vm2, %v4136_v13 }
 0x260   :  { %v3644_v15 = vpop.f32.mrb[0].mxu1 }
 0x261   :  { %v4256_v16 = vadd.f32 %v3644_v15, %v141_v12  ;;  %v214_v17 = vpop.f32.mrb[1].mxu1 }
 0x262   :  { %v4258_v18 = vadd.f32 %v214_v17, %v140_v14 }
 0x263   :  { %230 = vrot.lane.b32.xlu1 %v4256_v16, %s4138_s2  ;;  %225 = vst.msk [vmem:[#allocation2 + $0x8] sm:$0xff] %vm223_vm1, %v4256_v16 }
 0x264   :  { %228 = vrot.lane.b32.xlu0 %v4258_v18, %s4138_s2  ;;  %224 = vst.msk [vmem:[#allocation2] sm:$0xff] %vm223_vm1, %v4258_v18  ;;  %s4166_s2 = smov 28  }
 0x267   :  { %255 = vrot.lane.b32.xlu1 %v4256_v16, %s4139_s21 }
 0x268   :  { %244 = vrot.lane.b32.xlu0 %v4258_v18, %s4140_s22 }
 0x26a   :  { %v450_v31 = vld [vmem:[#allocation2 + $0x8] sm:$0xff] }
 0x26b   :  { %246 = vrot.lane.b32.xlu1 %v4256_v16, %s4140_s22  ;;  %v449_v27 = vld [vmem:[#allocation2] sm:$0xff] }
 0x26c   :  { %280 = vrot.lane.b32.xlu0 %v4258_v18, %s4141_s23 }
 0x26f   :  { %282 = vrot.lane.b32.xlu1 %v4256_v16, %s4141_s23 }
 0x270   :  { %271 = vrot.lane.b32.xlu0 %v4258_v18, %s4142_s26 }
 0x273   :  { %273 = vrot.lane.b32.xlu1 %v4256_v16, %s4142_s26 }
 0x274   :  { %307 = vrot.lane.b32.xlu0 %v4258_v18, %s4143_s27 }
 0x277   :  { %309 = vrot.lane.b32.xlu1 %v4256_v16, %s4143_s27 }
 0x278   :  { %298 = vrot.lane.b32.xlu0 %v4258_v18, %s4144_s28 }
 0x27b   :  { %300 = vrot.lane.b32.xlu1 %v4256_v16, %s4144_s28 }
 0x27c   :  { %334 = vrot.lane.b32.xlu0 %v4258_v18, %s4145_s29 }
 0x27f   :  { %336 = vrot.lane.b32.xlu1 %v4256_v16, %s4145_s29 }
 0x280   :  { %325 = vrot.lane.b32.xlu0 %v4258_v18, %s4146_s30 }
 0x283   :  { %253 = vrot.lane.b32.xlu1 %v4258_v18, %s4139_s21  ;;  %s4167_s21 = smov [#allocation12]  }
 0x284   :  { %361 = vrot.lane.b32.xlu0 %v4258_v18, %s4147_s4  ;;  %s3467_s22 = sshll.u32 %s4167_s21, 4  ;;  %s3468_s22 = int_to_ptr.vmem [resolvable:$true] %s3467_s22 }
 0x285   :  { %s4103_s23 = scalar_lea.vmem %s3468_s22, 256  ;;  %p4108_p11 = scmp.lt.s32.totalorder %s3468_s22, %s3468_s22 }
 0x286   :  { %p4104_p10 = scmp.ne.s32.totalorder %s3468_s22, %s4103_s23  ;;  %p4109_p12 = scmp.lt.s32.totalorder %s4103_s23, %s4103_s23 }
 0x287   :  { %327 = vrot.lane.b32.xlu1 %v4256_v16, %s4146_s30 }
 0x288   :  { %352 = vrot.lane.b32.xlu0 %v4258_v18, %s4148_s5  ;;  %p4110_p13 = por %p4109_p12, %p4108_p11 }
 0x28a   :  { %p4111_p0 = pnand %p4110_p13, %p4104_p10 }
 0x28b   :  { %363 = vrot.lane.b32.xlu1 %v4256_v16, %s4147_s4 }
 0x28c   :  { %388 = vrot.lane.b32.xlu0 %v4258_v18, %s4149_s6 }
 0x28f   :  { %354 = vrot.lane.b32.xlu1 %v4256_v16, %s4148_s5 }
 0x290   :  { %379 = vrot.lane.b32.xlu0 %v4258_v18, %s4150_s7 }
 0x293   :  { %390 = vrot.lane.b32.xlu1 %v4256_v16, %s4149_s6 }
 0x294   :  { %415 = vrot.lane.b32.xlu0 %v4258_v18, %s4151_s8 }
 0x297   :  { %381 = vrot.lane.b32.xlu1 %v4256_v16, %s4150_s7 }
 0x298   :  { %406 = vrot.lane.b32.xlu0 %v4258_v18, %s4152_s1 }
 0x29b   :  { %417 = vrot.lane.b32.xlu1 %v4256_v16, %s4151_s8 }
 0x29c   :  { %236 = vrot.lane.b32.xlu0 %v4258_v18, %s4153_s9 }
 0x29f   :  { %408 = vrot.lane.b32.xlu1 %v4256_v16, %s4152_s1 }
 0x2a0   :  { %262 = vrot.lane.b32.xlu0 %v4258_v18, %s4154_s10 }
 0x2a3   :  { %238 = vrot.lane.b32.xlu1 %v4256_v16, %s4153_s9 }
 0x2a4   :  { %289 = vrot.lane.b32.xlu0 %v4258_v18, %s4155_s11 }
 0x2a7   :  { %264 = vrot.lane.b32.xlu1 %v4256_v16, %s4154_s10 }
 0x2a8   :  { %316 = vrot.lane.b32.xlu0 %v4258_v18, %s4156_s12 }
 0x2ab   :  { %291 = vrot.lane.b32.xlu1 %v4256_v16, %s4155_s11 }
 0x2ac   :  { %370 = vrot.lane.b32.xlu0 %v4258_v18, %s4157_s13 }
 0x2af   :  { %318 = vrot.lane.b32.xlu1 %v4256_v16, %s4156_s12 }
 0x2b3   :  { %345 = vrot.lane.b32.xlu1 %v4256_v16, %s4158_s14 }
 0x2b7   :  { %372 = vrot.lane.b32.xlu1 %v4256_v16, %s4157_s13 }
 0x2bb   :  { %343 = vrot.lane.b32.xlu1 %v4258_v18, %s4158_s14 }
 0x2d5   :  { %v231_v19 = vpop.permute.xlu1 %230 }
 0x2d6   :  { %235 = vst.msk [vmem:[#allocation3 + $0x8] sm:$0xff] %vm223_vm1, %v231_v19  ;;  %v229_v20 = vpop.permute.xlu0 %228 }
 0x2d7   :  { %234 = vst.msk [vmem:[#allocation3] sm:$0xff] %vm223_vm1, %v229_v20 }
 0x2d9   :  { %v256_v21 = vpop.permute.xlu1 %255 }
 0x2da   :  { %261 = vst.msk [vmem:[#allocation3 + $0x18] sm:$0xff] %vm223_vm1, %v256_v21  ;;  %v245_v22 = vpop.permute.xlu0 %244 }
 0x2db   :  { %251 = vst.msk [vmem:[#allocation2 + $0x10] sm:$0xff] %vm223_vm1, %v245_v22 }
 0x2dd   :  { %v247_v23 = vpop.permute.xlu1 %246  ;;  %v466_v29 = vld [vmem:[#allocation3 + $0x8] sm:$0xff] }
 0x2de   :  { %252 = vst.msk [vmem:[#allocation2 + $0x18] sm:$0xff] %vm223_vm1, %v247_v23  ;;  %v281_v24 = vpop.permute.xlu0 %280  ;;  %v465_v25 = vld [vmem:[#allocation3] sm:$0xff] }
 0x2df   :  { %287 = vst.msk [vmem:[#allocation3 + $0x20] sm:$0xff] %vm223_vm1, %v281_v24  ;;  %3646 = vmatpush3.xpose.msk.msra.mxu1 %vm223_vm1, %v465_v25 }
 0x2e0   :  { %3650 = vmatprep.subr.mxu1 %v4136_v13 }
 0x2e1   :  { %v283_v26 = vpop.permute.xlu1 %282  ;;  %v468_v33 = vld [vmem:[#allocation3 + $0x18] sm:$0xff] }
 0x2e2   :  { %288 = vst.msk [vmem:[#allocation3 + $0x28] sm:$0xff] %vm223_vm1, %v283_v26  ;;  %v272_v28 = vpop.permute.xlu0 %271  ;;  %3648 = vmatmul.mubr.msk.f32.vlgmr.msra.gmra.mrb[2].mxu1 %vm223_vm1, %v449_v27  ;;  %v451_v53 = vld [vmem:[#allocation2 + $0x10] sm:$0xff] }
 0x2e3   :  { %278 = vst.msk [vmem:[#allocation2 + $0x20] sm:$0xff] %vm223_vm1, %v272_v28  ;;  %3651 = vmatpush3.xpose.msk.msra.mxu1 %vm223_vm1, %v466_v29  ;;  %3652 = vmatprep.mubr.msk.f32.mxu1 %vm4137_vm2, %v4136_v13 }
 0x2e4   :  { %3660 = vmatprep.subr.mxu1 %v4136_v13 }
 0x2e5   :  { %v274_v30 = vpop.permute.xlu1 %273  ;;  %v452_v35 = vld [vmem:[#allocation2 + $0x18] sm:$0xff] }
 0x2e6   :  { %279 = vst.msk [vmem:[#allocation2 + $0x28] sm:$0xff] %vm223_vm1, %v274_v30  ;;  %v308_v32 = vpop.permute.xlu0 %307  ;;  %3653 = vmatmul.mubr.msk.f32.vlgmr.msra.gmra.mrb[4].mxu1 %vm223_vm1, %v450_v31  ;;  %v469_v55 = vld [vmem:[#allocation3 + $0x20] sm:$0xff] }
 0x2e7   :  { %314 = vst.msk [vmem:[#allocation3 + $0x30] sm:$0xff] %vm223_vm1, %v308_v32  ;;  %3661 = vmatpush3.xpose.msk.msra.mxu1 %vm223_vm1, %v468_v33  ;;  %3662 = vmatprep.mubr.msk.f32.mxu1 %vm4137_vm2, %v4136_v13 }
 0x2e8   :  { %3670 = vmatprep.subr.mxu1 %v4136_v13 }
 0x2e9   :  { %v310_v34 = vpop.permute.xlu1 %309  ;;  %v470_v36 = vld [vmem:[#allocation3 + $0x28] sm:$0xff] }
 0x2ea   :  { %315 = vst.msk [vmem:[#allocation3 + $0x38] sm:$0xff] %vm223_vm1, %v310_v34  ;;  %v299_v37 = vpop.permute.xlu0 %298  ;;  %3663 = vmatmul.mubr.msk.f32.vlgmr.msra.gmra.mrb[6].mxu1 %vm223_vm1, %v452_v35  ;;  %v453_v58 = vld [vmem:[#allocation2 + $0x20] sm:$0xff] }
 0x2eb   :  { %305 = vst.msk [vmem:[#allocation2 + $0x30] sm:$0xff] %vm223_vm1, %v299_v37  ;;  %3671 = vmatpush3.xpose.msk.msra.mxu1 %vm223_vm1, %v470_v36  ;;  %3672 = vmatprep.mubr.msk.f32.mxu1 %vm4137_vm2, %v4136_v13  ;;  %v433_v34 = vld [vmem:[#allocation9 + $0xa0] sm:$0xff] }
 0x2ec   :  { %3680 = vmatprep.subr.mxu1 %v4136_v13 }
 0x2ed   :  { %v301_v38 = vpop.permute.xlu1 %300  ;;  %v454_v39 = vld [vmem:[#allocation2 + $0x28] sm:$0xff] }
 0x2ee   :  { %306 = vst.msk [vmem:[#allocation2 + $0x38] sm:$0xff] %vm223_vm1, %v301_v38  ;;  %v335_v40 = vpop.permute.xlu0 %334  ;;  %3673 = vmatmul.mubr.msk.f32.vlgmr.msra.gmra.mrb[8].mxu1 %vm223_vm1, %v454_v39  ;;  %v471_v60 = vld [vmem:[#allocation3 + $0x30] sm:$0xff]  ;;  %v434_v38 = vld [vmem:[#allocation9 + $0xa8] sm:$0xff] }
 0x2ef   :  { %341 = vst.msk [vmem:[#allocation3 + $0x40] sm:$0xff] %vm223_vm1, %v335_v40  ;;  %3682 = vmatprep.mubr.msk.f32.mxu1 %vm4137_vm2, %v4136_v13 }
 0x2f1   :  { %v337_v41 = vpop.permute.xlu1 %336  ;;  %v472_v42 = vld [vmem:[#allocation3 + $0x38] sm:$0xff] }
 0x2f2   :  { %342 = vst.msk [vmem:[#allocation3 + $0x48] sm:$0xff] %vm223_vm1, %v337_v41  ;;  %v326_v43 = vpop.permute.xlu0 %325  ;;  %3681 = vmatpush3.xpose.msk.msra.mxu1 %vm223_vm1, %v472_v42  ;;  %v455_v63 = vld [vmem:[#allocation2 + $0x30] sm:$0xff] }
 0x2f3   :  { %332 = vst.msk [vmem:[#allocation2 + $0x40] sm:$0xff] %vm223_vm1, %v326_v43  ;;  %3690 = vmatprep.subr.mxu1 %v4136_v13 }
 0x2f5   :  { %v254_v44 = vpop.permute.xlu1 %253  ;;  %v456_v45 = vld [vmem:[#allocation2 + $0x38] sm:$0xff] }
 0x2f6   :  { %260 = vst.msk [vmem:[#allocation3 + $0x10] sm:$0xff] %vm223_vm1, %v254_v44  ;;  %v362_v46 = vpop.permute.xlu0 %361  ;;  %3683 = vmatmul.mubr.msk.f32.vlgmr.msra.gmra.mrb[10].mxu1 %vm223_vm1, %v456_v45  ;;  %v473_v1 = vld [vmem:[#allocation3 + $0x40] sm:$0xff] }
 0x2f7   :  { %368 = vst.msk [vmem:[#allocation3 + $0x50] sm:$0xff] %vm223_vm1, %v362_v46  ;;  %3692 = vmatprep.mubr.msk.f32.mxu1 %vm4137_vm2, %v4136_v13  ;;  %v438_v46 = vld [vmem:[#allocation9 + $0xc8] sm:$0xff] }
 0x2f9   :  { %v328_v47 = vpop.permute.xlu1 %327  ;;  %v474_v48 = vld [vmem:[#allocation3 + $0x48] sm:$0xff] }
 0x2fa   :  { %333 = vst.msk [vmem:[#allocation2 + $0x48] sm:$0xff] %vm223_vm1, %v328_v47  ;;  %v353_v49 = vpop.permute.xlu0 %352  ;;  %3691 = vmatpush3.xpose.msk.msra.mxu1 %vm223_vm1, %v474_v48  ;;  %v457_v4 = vld [vmem:[#allocation2 + $0x40] sm:$0xff] }
 0x2fb   :  { %359 = vst.msk [vmem:[#allocation2 + $0x50] sm:$0xff] %vm223_vm1, %v353_v49  ;;  %3700 = vmatprep.subr.mxu1 %v4136_v13 }
 0x2fd   :  { %v364_v50 = vpop.permute.xlu1 %363  ;;  %v467_v51 = vld [vmem:[#allocation3 + $0x10] sm:$0xff] }
 0x2fe   :  { %369 = vst.msk [vmem:[#allocation3 + $0x58] sm:$0xff] %vm223_vm1, %v364_v50  ;;  %3656 = vmatpush3.xpose.msk.msra.mxu0 %vm223_vm1, %v467_v51  ;;  %v389_v52 = vpop.permute.xlu0 %388  ;;  %v475_v6 = vld [vmem:[#allocation3 + $0x50] sm:$0xff]  ;;  %v440_v51 = vld [vmem:[#allocation9 + $0xd8] sm:$0xff] }
 0x2ff   :  { %395 = vst.msk [vmem:[#allocation3 + $0x60] sm:$0xff] %vm223_vm1, %v389_v52  ;;  %3665 = vmatprep.subr.mxu0 %v4136_v13 }
 0x301   :  { %v355_v54 = vpop.permute.xlu1 %354  ;;  %3658 = vmatmul.mubr.msk.f32.vlgmr.msra.gmra.mrb[0].mxu0 %vm223_vm1, %v451_v53  ;;  %v458_v56 = vld [vmem:[#allocation2 + $0x48] sm:$0xff] }
 0x302   :  { %360 = vst.msk [vmem:[#allocation2 + $0x58] sm:$0xff] %vm223_vm1, %v355_v54  ;;  %3666 = vmatpush3.xpose.msk.msra.mxu0 %vm223_vm1, %v469_v55  ;;  %v380_v57 = vpop.permute.xlu0 %379  ;;  %3693 = vmatmul.mubr.msk.f32.vlgmr.msra.gmra.mrb[12].mxu1 %vm223_vm1, %v458_v56  ;;  %v459_v9 = vld [vmem:[#allocation2 + $0x50] sm:$0xff] }
 0x303   :  { %386 = vst.msk [vmem:[#allocation2 + $0x60] sm:$0xff] %vm223_vm1, %v380_v57  ;;  %3667 = vmatprep.mubr.msk.f32.mxu0 %vm4137_vm2, %v4136_v13  ;;  %3675 = vmatprep.subr.mxu0 %v4136_v13  ;;  %v435_v56 = vld [vmem:[#allocation9 + $0xb0] sm:$0xff]  ;;  %v442_v57 = vld [vmem:[#allocation9 + $0xe8] sm:$0xff] }
 0x304   :  { %3702 = vmatprep.mubr.msk.f32.mxu1 %vm4137_vm2, %v4136_v13 }
 0x305   :  { %v391_v59 = vpop.permute.xlu1 %390  ;;  %3668 = vmatmul.mubr.msk.f32.vlgmr.msra.gmra.mrb[2].mxu0 %vm223_vm1, %v453_v58  ;;  %v476_v61 = vld [vmem:[#allocation3 + $0x58] sm:$0xff] }
 0x306   :  { %396 = vst.msk [vmem:[#allocation3 + $0x68] sm:$0xff] %vm223_vm1, %v391_v59  ;;  %3676 = vmatpush3.xpose.msk.msra.mxu0 %vm223_vm1, %v471_v60  ;;  %v416_v62 = vpop.permute.xlu0 %415  ;;  %3701 = vmatpush3.xpose.msk.msra.mxu1 %vm223_vm1, %v476_v61  ;;  %v477_v11 = vld [vmem:[#allocation3 + $0x60] sm:$0xff] }
 0x307   :  { %422 = vst.msk [vmem:[#allocation3 + $0x70] sm:$0xff] %vm223_vm1, %v416_v62  ;;  %3677 = vmatprep.mubr.msk.f32.mxu0 %vm4137_vm2, %v4136_v13  ;;  %3685 = vmatprep.subr.mxu0 %v4136_v13 }
 0x308   :  { %3710 = vmatprep.subr.mxu1 %v4136_v13 }
 0x309   :  { %v382_v0 = vpop.permute.xlu1 %381  ;;  %3678 = vmatmul.mubr.msk.f32.vlgmr.msra.gmra.mrb[4].mxu0 %vm223_vm1, %v455_v63  ;;  %v460_v2 = vld [vmem:[#allocation2 + $0x58] sm:$0xff] }
 0x30a   :  { %387 = vst.msk [vmem:[#allocation2 + $0x68] sm:$0xff] %vm223_vm1, %v382_v0  ;;  %3686 = vmatpush3.xpose.msk.msra.mxu0 %vm223_vm1, %v473_v1  ;;  %v407_v3 = vpop.permute.xlu0 %406  ;;  %3703 = vmatmul.mubr.msk.f32.vlgmr.msra.gmra.mrb[14].mxu1 %vm223_vm1, %v460_v2  ;;  %v461_v15 = vld [vmem:[#allocation2 + $0x60] sm:$0xff]  ;;  %v436_v2 = vld [vmem:[#allocation9 + $0xb8] sm:$0xff] }
 0x30b   :  { %413 = vst.msk [vmem:[#allocation2 + $0x70] sm:$0xff] %vm223_vm1, %v407_v3  ;;  %3687 = vmatprep.mubr.msk.f32.mxu0 %vm4137_vm2, %v4136_v13  ;;  %3695 = vmatprep.subr.mxu0 %v4136_v13  ;;  %v437_v0 = vld [vmem:[#allocation9 + $0xc0] sm:$0xff] }
 0x30c   :  { %3712 = vmatprep.mubr.msk.f32.mxu1 %vm4137_vm2, %v4136_v13 }
 0x30d   :  { %v418_v5 = vpop.permute.xlu1 %417  ;;  %3688 = vmatmul.mubr.msk.f32.vlgmr.msra.gmra.mrb[6].mxu0 %vm223_vm1, %v457_v4  ;;  %v478_v7 = vld [vmem:[#allocation3 + $0x68] sm:$0xff] }
 0x30e   :  { %423 = vst.msk [vmem:[#allocation3 + $0x78] sm:$0xff] %vm223_vm1, %v418_v5  ;;  %3696 = vmatpush3.xpose.msk.msra.mxu0 %vm223_vm1, %v475_v6  ;;  %v237_v8 = vpop.permute.xlu0 %236  ;;  %3711 = vmatpush3.xpose.msk.msra.mxu1 %vm223_vm1, %v478_v7  ;;  %v479_v19 = vld [vmem:[#allocation3 + $0x70] sm:$0xff] }
 0x30f   :  { %242 = vst.msk [vmem:[#allocation4] sm:$0xff] %vm223_vm1, %v237_v8  ;;  %3697 = vmatprep.mubr.msk.f32.mxu0 %vm4137_vm2, %v4136_v13  ;;  %3705 = vmatprep.subr.mxu0 %v4136_v13 }
 0x310   :  { %3720 = vmatprep.subr.mxu1 %v4136_v13 }
 0x311   :  { %v409_v10 = vpop.permute.xlu1 %408  ;;  %3698 = vmatmul.mubr.msk.f32.vlgmr.msra.gmra.mrb[8].mxu0 %vm223_vm1, %v459_v9  ;;  %v462_v12 = vld [vmem:[#allocation2 + $0x68] sm:$0xff]  ;;  %v444_v9 = vld [vmem:[#allocation9 + $0xf8] sm:$0xff] }
 0x312   :  { %414 = vst.msk [vmem:[#allocation2 + $0x78] sm:$0xff] %vm223_vm1, %v409_v10  ;;  %3706 = vmatpush3.xpose.msk.msra.mxu0 %vm223_vm1, %v477_v11  ;;  %v263_v14 = vpop.permute.xlu0 %262  ;;  %3713 = vmatmul.mubr.msk.f32.vlgmr.msra.gmra.mrb[16].mxu1 %vm223_vm1, %v462_v12  ;;  %v463_v22 = vld [vmem:[#allocation2 + $0x70] sm:$0xff] }
 0x313   :  { %269 = vst.msk [vmem:[#allocation4 + $0x10] sm:$0xff] %vm223_vm1, %v263_v14  ;;  %3707 = vmatprep.mubr.msk.f32.mxu0 %vm4137_vm2, %v4136_v13  ;;  %3715 = vmatprep.subr.mxu0 %v4136_v13  ;;  %v439_v10 = vld [vmem:[#allocation9 + $0xd0] sm:$0xff] }
 0x314   :  { %3722 = vmatprep.mubr.msk.f32.mxu1 %vm4137_vm2, %v4136_v13 }
 0x315   :  { %v239_v17 = vpop.permute.xlu1 %238  ;;  %3708 = vmatmul.mubr.msk.f32.vlgmr.msra.gmra.mrb[10].mxu0 %vm223_vm1, %v461_v15  ;;  %v480_v20 = vld [vmem:[#allocation3 + $0x78] sm:$0xff] }
 0x316   :  { %243 = vst.msk [vmem:[#allocation4 + $0x8] sm:$0xff] %vm223_vm1, %v239_v17  ;;  %3716 = vmatpush3.xpose.msk.msra.mxu0 %vm223_vm1, %v479_v19  ;;  %v290_v21 = vpop.permute.xlu0 %289  ;;  %3721 = vmatpush3.xpose.msk.msra.mxu1 %vm223_vm1, %v480_v20  ;;  %v1874_v24 = vld [vmem:[#allocation4] sm:$0xff] }
 0x317   :  { %296 = vst.msk [vmem:[#allocation4 + $0x20] sm:$0xff] %vm223_vm1, %v290_v21  ;;  %3717 = vmatprep.mubr.msk.f32.mxu0 %vm4137_vm2, %v4136_v13  ;;  %3725 = vmatprep.subr.mxu0 %v4136_v13  ;;  %v441_v21 = vld [vmem:[#allocation9 + $0xe0] sm:$0xff] }
 0x318   :  { %3730 = vmatprep.subr.mxu1 %v4136_v13 }
 0x319   :  { %v265_v23 = vpop.permute.xlu1 %264  ;;  %3718 = vmatmul.mubr.msk.f32.vlgmr.msra.gmra.mrb[12].mxu0 %vm223_vm1, %v463_v22  ;;  %v464_v25 = vld [vmem:[#allocation2 + $0x78] sm:$0xff] }
 0x31a   :  { %270 = vst.msk [vmem:[#allocation4 + $0x18] sm:$0xff] %vm223_vm1, %v265_v23  ;;  %3726 = vmatpush3.msra.mxu0 %v1874_v24  ;;  %v317_v26 = vpop.permute.xlu0 %316  ;;  %3723 = vmatmul.mubr.msk.f32.vlgmr.msra.gmra.mrb[18].mxu1 %vm223_vm1, %v464_v25 }
 0x31b   :  { %323 = vst.msk [vmem:[#allocation4 + $0x30] sm:$0xff] %vm223_vm1, %v317_v26  ;;  %3727 = vmatprep.mubr.msk.f32.mxu0 %vm4137_vm2, %v4136_v13  ;;  %3735 = vmatprep.subr.mxu0 %v4136_v13 }
 0x31c   :  { %3732 = vmatprep.mubr.msk.f32.mxu1 %vm4137_vm2, %v4136_v13 }
 0x31d   :  { %v292_v27 = vpop.permute.xlu1 %291  ;;  %v1875_v28 = vld [vmem:[#allocation4 + $0x8] sm:$0xff] }
 0x31e   :  { %297 = vst.msk [vmem:[#allocation4 + $0x28] sm:$0xff] %vm223_vm1, %v292_v27  ;;  %v371_v29 = vpop.permute.xlu0 %370  ;;  %3731 = vmatpush3.msra.mxu1 %v1875_v28  ;;  %v446_v27 = vld [vmem:[#allocation9 + $0x108] sm:$0xff]  ;;  %v443_v28 = vld [vmem:[#allocation9 + $0xf0] sm:$0xff] }
 0x31f   :  { %377 = vst.msk [vmem:[#allocation4 + $0x50] sm:$0xff] %vm223_vm1, %v371_v29  ;;  %3740 = vmatprep.subr.mxu1 %v4136_v13 }
 0x321   :  { %v319_v30 = vpop.permute.xlu1 %318 }
 0x322   :  { %324 = vst.msk [vmem:[#allocation4 + $0x38] sm:$0xff] %vm223_vm1, %v319_v30 }
 0x325   :  { %v346_v31 = vpop.permute.xlu1 %345 }
 0x326   :  { %351 = vst.msk [vmem:[#allocation4 + $0x48] sm:$0xff] %vm223_vm1, %v346_v31 }
 0x329   :  { %v373_v32 = vpop.permute.xlu1 %372 }
 0x32a   :  { %378 = vst.msk [vmem:[#allocation4 + $0x58] sm:$0xff] %vm223_vm1, %v373_v32 }
 0x32d   :  { %v344_v33 = vpop.permute.xlu1 %343 }
 0x32e   :  { %350 = vst.msk [vmem:[#allocation4 + $0x40] sm:$0xff] %vm223_vm1, %v344_v33 }
 0x3b5   :  { %v553_v35 = vpop.f32.mrb[2].mxu1 }
 0x3b6   :  { %v4430_v36 = vadd.f32 %v553_v35, %v433_v34  ;;  %v3649_v37 = vpop.f32.mrb[3].mxu1 }
 0x3b7   :  { %v445_v37 = vld [vmem:[#allocation9 + $0x100] sm:$0xff] }
 0x3b8   :  { %v1698_v39 = vsel %vm1697_vm3, %v4430_v36, -inf }
 0x3b9   :  { %1699 = vmax.xlane.f32.xlu0 %v1698_v39  ;;  %v629_v40 = vpop.f32.mrb[4].mxu1 }
 0x3ba   :  { %v4434_v41 = vadd.f32 %v629_v40, %v434_v38  ;;  %v3654_v42 = vpop.f32.mrb[5].mxu1 }
 0x3bc   :  { %v1701_v43 = vsel %vm1697_vm3, %v4434_v41, -inf }
 0x3bd   :  { %1702 = vmax.xlane.f32.xlu1 %v1701_v43  ;;  %v781_v44 = vpop.f32.mrb[6].mxu1 }
 0x3be   :  { %v3664_v45 = vpop.f32.mrb[7].mxu1  ;;  %v4456_v7 = vadd.f32 %v781_v44, %v436_v2  ;;  %v448_v44 = vld [vmem:[#allocation9 + $0x118] sm:$0xff] }
 0x3bf   :  { %v447_v45 = vld [vmem:[#allocation9 + $0x110] sm:$0xff] }
 0x3c0   :  { %v1707_v20 = vsel %vm1697_vm3, %v4456_v7, -inf }
 0x3c1   :  { %v933_v47 = vpop.f32.mrb[8].mxu1 }
 0x3c2   :  { %v4438_v48 = vadd.f32 %v933_v47, %v438_v46  ;;  %v3674_v49 = vpop.f32.mrb[9].mxu1 }
 0x3c4   :  { %v1713_v50 = vsel %vm1697_vm3, %v4438_v48, -inf }
 0x3c5   :  { %1714 = vmax.xlane.f32.xlu1 %v1713_v50 }
 0x3c9   :  { %v1085_v52 = vpop.f32.mrb[10].mxu1 }
 0x3ca   :  { %v4442_v53 = vadd.f32 %v1085_v52, %v440_v51  ;;  %v3684_v54 = vpop.f32.mrb[11].mxu1 }
 0x3cc   :  { %v1719_v55 = vsel %vm1697_vm3, %v4442_v53, -inf }
 0x3cd   :  { %1720 = vmax.xlane.f32.xlu1 %v1719_v55 }
 0x3d4   :  { %v705_v58 = vpop.f32.mrb[0].mxu0 }
 0x3d5   :  { %v4446_v59 = vadd.f32 %v705_v58, %v435_v56  ;;  %v3659_v60 = vpop.f32.mrb[1].mxu0  ;;  %v1237_v61 = vpop.f32.mrb[12].mxu1 }
 0x3d6   :  { %v4448_v62 = vadd.f32 %v1237_v61, %v442_v57  ;;  %v3694_v63 = vpop.f32.mrb[13].mxu1 }
 0x3d7   :  { %v1704_v1 = vsel %vm1697_vm3, %v4446_v59, -inf }
 0x3d8   :  { %v857_v3 = vpop.f32.mrb[2].mxu0  ;;  %1705 = vmax.xlane.f32.xlu0 %v1704_v1  ;;  %v1725_v4 = vsel %vm1697_vm3, %v4448_v62, -inf }
 0x3d9   :  { %v4454_v5 = vadd.f32 %v857_v3, %v437_v0  ;;  %v3669_v6 = vpop.f32.mrb[3].mxu0  ;;  %1726 = vmax.xlane.f32.xlu1 %v1725_v4 }
 0x3db   :  { %v1710_v8 = vsel %vm1697_vm3, %v4454_v5, -inf }
 0x3dc   :  { %v1009_v11 = vpop.f32.mrb[4].mxu0  ;;  %1711 = vmax.xlane.f32.xlu0 %v1710_v8 }
 0x3dd   :  { %v3679_v12 = vpop.f32.mrb[5].mxu0  ;;  %v1389_v14 = vpop.f32.mrb[14].mxu1  ;;  %v4462_v19 = vadd.f32 %v1009_v11, %v439_v10 }
 0x3de   :  { %v4460_v15 = vadd.f32 %v1389_v14, %v444_v9  ;;  %v3704_v17 = vpop.f32.mrb[15].mxu1 }
 0x3df   :  { %v1716_v26 = vsel %vm1697_vm3, %v4462_v19, -inf }
 0x3e0   :  { %v1161_v22 = vpop.f32.mrb[6].mxu0  ;;  %1708 = vmax.xlane.f32.xlu0 %v1707_v20  ;;  %v1731_v23 = vsel %vm1697_vm3, %v4460_v15, -inf }
 0x3e1   :  { %v3689_v24 = vpop.f32.mrb[7].mxu0  ;;  %1732 = vmax.xlane.f32.xlu1 %v1731_v23  ;;  %v4468_v25 = vadd.f32 %v1161_v22, %v441_v21 }
 0x3e3   :  { %v1722_v35 = vsel %vm1697_vm3, %v4468_v25, -inf }
 0x3e4   :  { %v1313_v29 = vpop.f32.mrb[8].mxu0  ;;  %1717 = vmax.xlane.f32.xlu0 %v1716_v26 }
 0x3e5   :  { %v3699_v30 = vpop.f32.mrb[9].mxu0  ;;  %v1541_v31 = vpop.f32.mrb[16].mxu1  ;;  %v4474_v34 = vadd.f32 %v1313_v29, %v443_v28 }
 0x3e6   :  { %v4472_v32 = vadd.f32 %v1541_v31, %v446_v27  ;;  %v3714_v33 = vpop.f32.mrb[17].mxu1 }
 0x3e7   :  { %v1728_v43 = vsel %vm1697_vm3, %v4474_v34, -inf }
 0x3e8   :  { %v1465_v38 = vpop.f32.mrb[10].mxu0  ;;  %1723 = vmax.xlane.f32.xlu0 %v1722_v35  ;;  %v1737_v39 = vsel %vm1697_vm3, %v4472_v32, -inf }
 0x3e9   :  { %v3709_v40 = vpop.f32.mrb[11].mxu0  ;;  %1738 = vmax.xlane.f32.xlu1 %v1737_v39  ;;  %v4480_v42 = vadd.f32 %v1465_v38, %v445_v37 }
 0x3eb   :  { %v1734_v54 = vsel %vm1697_vm3, %v4480_v42, -inf }
 0x3ec   :  { %v1617_v46 = vpop.f32.mrb[12].mxu0  ;;  %1729 = vmax.xlane.f32.xlu0 %v1728_v43 }
 0x3ed   :  { %v3719_v47 = vpop.f32.mrb[13].mxu0  ;;  %v1693_v49 = vpop.f32.mrb[18].mxu1  ;;  %v4486_v52 = vadd.f32 %v1617_v46, %v447_v45 }
 0x3ee   :  { %v4484_v50 = vadd.f32 %v1693_v49, %v448_v44  ;;  %v3724_v51 = vpop.f32.mrb[19].mxu1 }
 0x3ef   :  { %v1740_v56 = vsel %vm1697_vm3, %v4486_v52, -inf }
 0x3f0   :  { %1735 = vmax.xlane.f32.xlu0 %v1734_v54  ;;  %v1743_v55 = vsel %vm1697_vm3, %v4484_v50, -inf }
 0x3f1   :  { %1744 = vmax.xlane.f32.xlu1 %v1743_v55 }
 0x3f4   :  { %1741 = vmax.xlane.f32.xlu0 %v1740_v56 }
 0x402   :  { %399 = vrot.lane.b32.xlu1 %v4256_v16, %s4159_s16 }
 0x40a   :  { %397 = vrot.lane.b32.xlu0 %v4258_v18, %s4159_s16 }
 0x446   :  { %v1700_v57 = vpop.xlane.xlu0 %1699 }
 0x447   :  { %v1746_v58 = vsub.f32 %v4430_v36, %v1700_v57 }
 0x449   :  { %v1762_v60 = vmul.f32 1.442695, %v1746_v58 }
 0x44a   :  { %v1703_v61 = vpop.xlane.xlu1 %1702 }
 0x44b   :  { %3963 = vpow2.f32 %v1762_v60  ;;  %v1747_v63 = vsub.f32 %v4434_v41, %v1703_v61 }
 0x44d   :  { %v1764_v0 = vmul.f32 1.442695, %v1747_v63 }
 0x44f   :  { %3965 = vpow2.f32 %v1764_v0 }
 0x452   :  { %v1715_v36 = vpop.xlane.xlu1 %1714 }
 0x453   :  { %v1751_v12 = vsub.f32 %v4438_v48, %v1715_v36 }
 0x455   :  { %v4498_v1 = vpop.eup %3963  ;;  %v1772_v22 = vmul.f32 1.442695, %v1751_v12 }
 0x456   :  { %v1794_v2 = vsel %vm1697_vm3, %v4498_v1, 0.0 }
 0x457   :  { %1795 = vadd.xlane.f32.xlu0 %v1794_v2 }
 0x459   :  { %v4502_v3 = vpop.eup %3965 }
 0x45a   :  { %v1797_v4 = vsel %vm1697_vm3, %v4502_v3, 0.0  ;;  %v1721_v41 = vpop.xlane.xlu1 %1720 }
 0x45b   :  { %1798 = vadd.xlane.f32.xlu1 %v1797_v4  ;;  %v1753_v23 = vsub.f32 %v4442_v53, %v1721_v41 }
 0x465   :  { %v1706_v6 = vpop.xlane.xlu0 %1705 }
 0x466   :  { %v1748_v8 = vsub.f32 %v4446_v59, %v1706_v6  ;;  %v1727_v17 = vpop.xlane.xlu1 %1726 }
 0x467   :  { %v1755_v33 = vsub.f32 %v4448_v62, %v1727_v17 }
 0x468   :  { %v1766_v9 = vmul.f32 1.442695, %v1748_v8 }
 0x469   :  { %v1712_v10 = vpop.xlane.xlu0 %1711 }
 0x46a   :  { %3967 = vpow2.f32 %v1766_v9  ;;  %v1750_v11 = vsub.f32 %v4454_v5, %v1712_v10  ;;  %v1776_v5 = vmul.f32 1.442695, %v1753_v23 }
 0x46c   :  { %v1770_v14 = vmul.f32 1.442695, %v1750_v11 }
 0x46d   :  { %v1709_v20 = vpop.xlane.xlu0 %1708 }
 0x46e   :  { %3969 = vpow2.f32 %v1770_v14  ;;  %v1749_v21 = vsub.f32 %v4456_v7, %v1709_v20  ;;  %v1733_v26 = vpop.xlane.xlu1 %1732 }
 0x46f   :  { %v1757_v48 = vsub.f32 %v4460_v15, %v1733_v26 }
 0x470   :  { %v1768_v24 = vmul.f32 1.442695, %v1749_v21 }
 0x471   :  { %v1718_v59 = vpop.xlane.xlu0 %1717 }
 0x472   :  { %3971 = vpow2.f32 %v1768_v24  ;;  %v1752_v27 = vsub.f32 %v4462_v19, %v1718_v59  ;;  %v1784_v19 = vmul.f32 1.442695, %v1757_v48 }
 0x473   :  { %3973 = vpow2.f32 %v1772_v22 }
 0x474   :  { %v4512_v28 = vpop.eup %3967  ;;  %v1774_v29 = vmul.f32 1.442695, %v1752_v27  ;;  %v1876_v27 = vld [vmem:[#allocation4 + $0x10] sm:$0xff] }
 0x475   :  { %v1724_v30 = vpop.xlane.xlu0 %1723  ;;  %v1800_v7 = vsel %vm1697_vm3, %v4512_v28, 0.0 }
 0x476   :  { %3975 = vpow2.f32 %v1774_v29  ;;  %v1754_v53 = vsub.f32 %v4468_v25, %v1724_v30  ;;  %1801 = vadd.xlane.f32.xlu0 %v1800_v7  ;;  %v1739_v31 = vpop.xlane.xlu1 %1738  ;;  %v1780_v25 = vmul.f32 1.442695, %v1755_v33 }
 0x477   :  { %3977 = vpow2.f32 %v1776_v5  ;;  %v1759_v38 = vsub.f32 %v4472_v32, %v1739_v31  ;;  %v1878_v31 = vld [vmem:[#allocation4 + $0x20] sm:$0xff] }
 0x478   :  { %v4519_v35 = vpop.eup %3969  ;;  %v1778_v37 = vmul.f32 1.442695, %v1754_v53 }
 0x479   :  { %v1730_v15 = vpop.xlane.xlu0 %1729  ;;  %v1806_v39 = vsel %vm1697_vm3, %v4519_v35, 0.0  ;;  %v1788_v62 = vmul.f32 1.442695, %v1759_v38 }
 0x47a   :  { %3979 = vpow2.f32 %v1778_v37  ;;  %v1756_v40 = vsub.f32 %v4474_v34, %v1730_v15  ;;  %1807 = vadd.xlane.f32.xlu0 %v1806_v39 }
 0x47b   :  { %3981 = vpow2.f32 %v1784_v19 }
 0x47c   :  { %v4525_v43 = vpop.eup %3971  ;;  %v1782_v44 = vmul.f32 1.442695, %v1756_v40 }
 0x47d   :  { %v1736_v45 = vpop.xlane.xlu0 %1735  ;;  %v1803_v46 = vsel %vm1697_vm3, %v4525_v43, 0.0  ;;  %v4529_v47 = vpop.eup %3973 }
 0x47e   :  { %3983 = vpow2.f32 %v1782_v44  ;;  %v1758_v32 = vsub.f32 %v4480_v42, %v1736_v45  ;;  %1804 = vadd.xlane.f32.xlu1 %v1803_v46  ;;  %v1745_v49 = vpop.xlane.xlu1 %1744  ;;  %v1809_v58 = vsel %vm1697_vm3, %v4529_v47, 0.0 }
 0x47f   :  { %3985 = vpow2.f32 %v1780_v25  ;;  %v1761_v34 = vsub.f32 %v4484_v50, %v1745_v49  ;;  %v1882_v49 = vld [vmem:[#allocation4 + $0x40] sm:$0xff] }
 0x480   :  { %v4533_v51 = vpop.eup %3975  ;;  %3987 = vpow2.f32 %v1788_v62  ;;  %v1786_v54 = vmul.f32 1.442695, %v1758_v32 }
 0x481   :  { %v1792_v55 = vmul.f32 1.442695, %v1761_v34  ;;  %v1742_v56 = vpop.xlane.xlu0 %1741  ;;  %v1812_v57 = vsel %vm1697_vm3, %v4533_v51, 0.0  ;;  %v4539_v60 = vpop.eup %3977 }
 0x482   :  { %v1760_v42 = vsub.f32 %v4486_v52, %v1742_v56  ;;  %1813 = vadd.xlane.f32.xlu0 %v1812_v57  ;;  %1810 = vadd.xlane.f32.xlu1 %v1809_v58  ;;  %v400_v61 = vpop.permute.xlu1 %399  ;;  %3989 = vpow2.f32 %v1786_v54  ;;  %v1815_v4 = vsel %vm1697_vm3, %v4539_v60, 0.0  ;;  %v1881_v54 = vld [vmem:[#allocation4 + $0x38] sm:$0xff]  ;;  %v1884_v58 = vld [vmem:[#allocation4 + $0x50] sm:$0xff] }
 0x483   :  { %405 = vst.msk [vmem:[#allocation4 + $0x68] sm:$0xff] %vm223_vm1, %v400_v61  ;;  %3991 = vpow2.f32 %v1792_v55 }
 0x484   :  { %v4543_v50 = vpop.eup %3979  ;;  %v1790_v63 = vmul.f32 1.442695, %v1760_v42  ;;  %v1883_v42 = vld [vmem:[#allocation4 + $0x48] sm:$0xff] }
 0x485   :  { %v398_v0 = vpop.permute.xlu0 %397  ;;  %v1818_v2 = vsel %vm1697_vm3, %v4543_v50, 0.0  ;;  %v4549_v36 = vpop.eup %3981 }
 0x486   :  { %404 = vst.msk [vmem:[#allocation4 + $0x60] sm:$0xff] %vm223_vm1, %v398_v0  ;;  %1819 = vadd.xlane.f32.xlu0 %v1818_v2  ;;  %1816 = vadd.xlane.f32.xlu1 %v1815_v4  ;;  %3993 = vpow2.f32 %v1790_v63  ;;  %v1827_v8 = vsel %vm1697_vm3, %v4549_v36, 0.0 }
 0x488   :  { %v4552_v52 = vpop.eup %3983 }
 0x489   :  { %v4554_v6 = vpop.eup %3985  ;;  %v1824_v9 = vsel %vm1697_vm3, %v4552_v52, 0.0 }
 0x48a   :  { %v4560_v41 = vpop.eup %3987  ;;  %1828 = vadd.xlane.f32.xlu0 %v1827_v8  ;;  %1825 = vadd.xlane.f32.xlu1 %v1824_v9  ;;  %v1821_v12 = vsel %vm1697_vm3, %v4554_v6, 0.0  ;;  %v1885_v9 = vld [vmem:[#allocation4 + $0x58] sm:$0xff] }
 0x48b   :  { %v1833_v11 = vsel %vm1697_vm3, %v4560_v41, 0.0 }
 0x48c   :  { %v4562_v10 = vpop.eup %3989 }
 0x48d   :  { %v4568_v14 = vpop.eup %3991  ;;  %v1830_v17 = vsel %vm1697_vm3, %v4562_v10, 0.0  ;;  %v1886_v0 = vld [vmem:[#allocation4 + $0x60] sm:$0xff] }
 0x48e   :  { %1834 = vadd.xlane.f32.xlu0 %v1833_v11  ;;  %1822 = vadd.xlane.f32.xlu1 %v1821_v12  ;;  %v1839_v20 = vsel %vm1697_vm3, %v4568_v14, 0.0 }
 0x490   :  { %v4574_v21 = vpop.eup %3993 }
 0x491   :  { %v1836_v22 = vsel %vm1697_vm3, %v4574_v21, 0.0 }
 0x492   :  { %1831 = vadd.xlane.f32.xlu1 %v1830_v17  ;;  %1840 = vadd.xlane.f32.xlu0 %v1839_v20 }
 0x496   :  { %1837 = vadd.xlane.f32.xlu1 %v1836_v22 }
 0x4a7   :  { %426 = vrot.lane.b32.xlu1 %v4256_v16, %s4160_s17  ;;  %v1877_v16 = vld [vmem:[#allocation4 + $0x18] sm:$0xff] }
 0x4a8   :  { %424 = vrot.lane.b32.xlu0 %v4258_v18, %s4160_s17 }
 0x4e4   :  { %v1796_v23 = vpop.xlane.xlu0 %1795 }
 0x4e5   :  { %3995 = vrcp.f32 %v1796_v23  ;;  %v1887_v23 = vld [vmem:[#allocation4 + $0x68] sm:$0xff] }
 0x4e8   :  { %v1799_v24 = vpop.xlane.xlu1 %1798 }
 0x4e9   :  { %3997 = vrcp.f32 %v1799_v24 }
 0x4ef   :  { %v3996_v26 = vpop.eup %3995 }
 0x4f0   :  { %v1858_v59 = vmul.f32 %v3996_v26, %v4498_v1 }
 0x4f2   :  { %3728 = vmatmul.mubr.msk.f32.vlgmr.msra.gmra.mrb[14].mxu0 %vm1697_vm3, %v1858_v59 }
 0x4f3   :  { %v3998_v5 = vpop.eup %3997  ;;  %3736 = vmatpush3.msra.mxu0 %v1876_v27  ;;  %3737 = vmatprep.mubr.msk.f32.mxu0 %vm4137_vm2, %v4136_v13 }
 0x4f4   :  { %v1859_v48 = vmul.f32 %v3998_v5, %v4502_v3  ;;  %3745 = vmatprep.subr.mxu0 %v4136_v13 }
 0x4f6   :  { %3733 = vmatmul.mubr.msk.f32.vlgmr.msra.gmra.mrb[20].mxu1 %vm1697_vm3, %v1859_v48 }
 0x4f7   :  { %3741 = vmatpush3.msra.mxu1 %v1877_v16  ;;  %3742 = vmatprep.mubr.msk.f32.mxu1 %vm4137_vm2, %v4136_v13 }
 0x4f8   :  { %3750 = vmatprep.subr.mxu1 %v4136_v13 }
 0x503   :  { %v1802_v18 = vpop.xlane.xlu0 %1801 }
 0x504   :  { %3999 = vrcp.f32 %v1802_v18 }
 0x507   :  { %v1808_v1 = vpop.xlane.xlu0 %1807 }
 0x508   :  { %4001 = vrcp.f32 %v1808_v1 }
 0x50b   :  { %v1805_v29 = vpop.xlane.xlu1 %1804 }
 0x50c   :  { %4003 = vrcp.f32 %v1805_v29 }
 0x50e   :  { %v4000_v30 = vpop.eup %3999 }
 0x50f   :  { %v1860_v3 = vmul.f32 %v4000_v30, %v4512_v28  ;;  %v1814_v7 = vpop.xlane.xlu0 %1813  ;;  %v1811_v53 = vpop.xlane.xlu1 %1810  ;;  %v1880_v28 = vld [vmem:[#allocation4 + $0x30] sm:$0xff] }
 0x510   :  { %4005 = vrcp.f32 %v1814_v7 }
 0x511   :  { %4007 = vrcp.f32 %v1811_v53  ;;  %3738 = vmatmul.mubr.msk.f32.vlgmr.msra.gmra.mrb[16].mxu0 %vm1697_vm3, %v1860_v3 }
 0x512   :  { %v4002_v33 = vpop.eup %4001  ;;  %3746 = vmatpush3.msra.mxu0 %v1878_v31  ;;  %3747 = vmatprep.mubr.msk.f32.mxu0 %vm4137_vm2, %v4136_v13 }
 0x513   :  { %v1862_v19 = vmul.f32 %v4002_v33, %v4519_v35  ;;  %v1820_v37 = vpop.xlane.xlu0 %1819  ;;  %v1817_v38 = vpop.xlane.xlu1 %1816  ;;  %3755 = vmatprep.subr.mxu0 %v4136_v13  ;;  %v1879_v35 = vld [vmem:[#allocation4 + $0x28] sm:$0xff] }
 0x514   :  { %4009 = vrcp.f32 %v1820_v37 }
 0x515   :  { %4011 = vrcp.f32 %v1817_v38  ;;  %3748 = vmatmul.mubr.msk.f32.vlgmr.msra.gmra.mrb[18].mxu0 %vm1697_vm3, %v1862_v19 }
 0x516   :  { %v4004_v15 = vpop.eup %4003  ;;  %3756 = vmatpush3.msra.mxu0 %v1880_v28  ;;  %3757 = vmatprep.mubr.msk.f32.mxu0 %vm4137_vm2, %v4136_v13  ;;  %v3137_v28 = vld [vmem:[#allocation11 + $0x40] sm:$0xff] }
 0x517   :  { %v1861_v39 = vmul.f32 %v4004_v15, %v4525_v43  ;;  %v1829_v40 = vpop.xlane.xlu0 %1828  ;;  %v1826_v25 = vpop.xlane.xlu1 %1825  ;;  %3765 = vmatprep.subr.mxu0 %v4136_v13  ;;  %v3138_v15 = vld [vmem:[#allocation11 + $0x48] sm:$0xff] }
 0x518   :  { %4013 = vrcp.f32 %v1826_v25  ;;  %v3139_v25 = vld [vmem:[#allocation11 + $0x50] sm:$0xff] }
 0x519   :  { %3743 = vmatmul.mubr.msk.f32.vlgmr.msra.gmra.mrb[22].mxu1 %vm1697_vm3, %v1861_v39  ;;  %v3870_v39 = vpack.c.bf16 %v3138_v15, %v3137_v28 }
 0x51a   :  { %v4006_v62 = vpop.eup %4005  ;;  %3751 = vmatpush3.msra.mxu1 %v1879_v35  ;;  %3752 = vmatprep.mubr.msk.f32.mxu1 %vm4137_vm2, %v4136_v13  ;;  %v3140_v35 = vld [vmem:[#allocation11 + $0x58] sm:$0xff] }
 0x51b   :  { %v4008_v44 = vpop.eup %4007  ;;  %v1864_v45 = vmul.f32 %v4006_v62, %v4533_v51  ;;  %v1835_v46 = vpop.xlane.xlu0 %1834  ;;  %3760 = vmatprep.subr.mxu1 %v4136_v13 }
 0x51c   :  { %v1823_v32 = vpop.xlane.xlu1 %1822  ;;  %v1863_v43 = vmul.f32 %v4008_v44, %v4529_v47  ;;  %v3874_v44 = vpack.c.bf16 %v3140_v35, %v3139_v25 }
 0x51d   :  { %4015 = vrcp.f32 %v1823_v32  ;;  %3758 = vmatmul.mubr.msk.f32.vlgmr.msra.gmra.mrb[20].mxu0 %vm1697_vm3, %v1864_v45 }
 0x51e   :  { %v4010_v34 = vpop.eup %4009  ;;  %3753 = vmatmul.mubr.msk.f32.vlgmr.msra.gmra.mrb[24].mxu1 %vm1697_vm3, %v1863_v43  ;;  %3766 = vmatpush3.msra.mxu0 %v1882_v49  ;;  %4017 = vrcp.f32 %v1829_v40 }
 0x51f   :  { %v4012_v55 = vpop.eup %4011  ;;  %v1866_v56 = vmul.f32 %v4010_v34, %v4543_v50  ;;  %3761 = vmatpush3.msra.mxu1 %v1881_v54  ;;  %v1841_v51 = vpop.xlane.xlu0 %1840  ;;  %3762 = vmatprep.mubr.msk.f32.mxu1 %vm4137_vm2, %v4136_v13 }
 0x520   :  { %v1832_v57 = vpop.xlane.xlu1 %1831  ;;  %v1865_v47 = vmul.f32 %v4012_v55, %v4539_v60  ;;  %3767 = vmatprep.mubr.msk.f32.mxu0 %vm4137_vm2, %v4136_v13  ;;  %3770 = vmatprep.subr.mxu1 %v4136_v13 }
 0x521   :  { %4019 = vrcp.f32 %v1832_v57  ;;  %3775 = vmatprep.subr.mxu0 %v4136_v13  ;;  %3768 = vmatmul.mubr.msk.f32.vlgmr.msra.gmra.mrb[22].mxu0 %vm1697_vm3, %v1866_v56 }
 0x522   :  { %3763 = vmatmul.mubr.msk.f32.vlgmr.msra.gmra.mrb[26].mxu1 %vm1697_vm3, %v1865_v47  ;;  %3776 = vmatpush3.msra.mxu0 %v1884_v58  ;;  %v4014_v61 = vpop.eup %4013  ;;  %4021 = vrcp.f32 %v1835_v46 }
 0x523   :  { %3771 = vmatpush3.msra.mxu1 %v1883_v42  ;;  %v425_v50 = vpop.permute.xlu0 %424  ;;  %3777 = vmatprep.mubr.msk.f32.mxu0 %vm4137_vm2, %v4136_v13  ;;  %v1868_v63 = vmul.f32 %v4014_v61, %v4552_v52 }
 0x524   :  { %v1838_v60 = vpop.xlane.xlu1 %1837  ;;  %431 = vst.msk [vmem:[#allocation4 + $0x70] sm:$0xff] %vm223_vm1, %v425_v50  ;;  %3785 = vmatprep.subr.mxu0 %v4136_v13  ;;  %3772 = vmatprep.mubr.msk.f32.mxu1 %vm4137_vm2, %v4136_v13 }
 0x525   :  { %4023 = vrcp.f32 %v1838_v60  ;;  %3780 = vmatprep.subr.mxu1 %v4136_v13  ;;  %3778 = vmatmul.mubr.msk.f32.vlgmr.msra.gmra.mrb[24].mxu0 %vm1697_vm3, %v1868_v63 }
 0x526   :  { %4025 = vrcp.f32 %v1841_v51  ;;  %3786 = vmatpush3.msra.mxu0 %v1886_v0  ;;  %3787 = vmatprep.mubr.msk.f32.mxu0 %vm4137_vm2, %v4136_v13 }
 0x527   :  { %v4016_v2 = vpop.eup %4015  ;;  %3795 = vmatprep.subr.mxu0 %v4136_v13 }
 0x528   :  { %v427_v4 = vpop.permute.xlu1 %426  ;;  %v1867_v52 = vmul.f32 %v4016_v2, %v4554_v6  ;;  %v4018_v8 = vpop.eup %4017 }
 0x529   :  { %432 = vst.msk [vmem:[#allocation4 + $0x78] sm:$0xff] %vm223_vm1, %v427_v4  ;;  %v1869_v12 = vmul.f32 %v4018_v8, %v4549_v36 }
 0x52a   :  { %3773 = vmatmul.mubr.msk.f32.vlgmr.msra.gmra.mrb[28].mxu1 %vm1697_vm3, %v1867_v52 }
 0x52b   :  { %v4020_v11 = vpop.eup %4019  ;;  %3781 = vmatpush3.msra.mxu1 %v1885_v9  ;;  %3782 = vmatprep.mubr.msk.f32.mxu1 %vm4137_vm2, %v4136_v13  ;;  %v1888_v6 = vld [vmem:[#allocation4 + $0x70] sm:$0xff] }
 0x52c   :  { %v1870_v17 = vmul.f32 %v4020_v11, %v4562_v10  ;;  %3790 = vmatprep.subr.mxu1 %v4136_v13  ;;  %v4022_v20 = vpop.eup %4021 }
 0x52d   :  { %v1871_v26 = vmul.f32 %v4022_v20, %v4560_v41  ;;  %v4035_v20 = vld [vmem:[#allocation6 + $0x8] sm:$0xff] }
 0x52e   :  { %3783 = vmatmul.mubr.msk.f32.vlgmr.msra.gmra.mrb[30].mxu1 %vm1697_vm3, %v1869_v12  ;;  %3788 = vmatmul.mubr.msk.f32.vlgmr.msra.gmra.mrb[26].mxu0 %vm1697_vm3, %v1870_v17 }
 0x52f   :  { %v4024_v22 = vpop.eup %4023  ;;  %3791 = vmatpush3.msra.mxu1 %v1887_v23  ;;  %3796 = vmatpush3.msra.mxu0 %v1888_v6  ;;  %v3227_v6 = vld [vmem:[#allocation9 + $0x68] sm:$0xff] }
 0x530   :  { %v1872_v24 = vmul.f32 %v4024_v22, %v4574_v21  ;;  %3792 = vmatprep.mubr.msk.f32.mxu1 %vm4137_vm2, %v4136_v13  ;;  %3797 = vmatprep.mubr.msk.f32.mxu0 %vm4137_vm2, %v4136_v13  ;;  %v1889_v36 = vld [vmem:[#allocation4 + $0x78] sm:$0xff]  ;;  %v4026_v10 = vpop.eup %4025 }
 0x531   :  { %3800 = vmatprep.subr.mxu1 %v4136_v13  ;;  %v1873_v41 = vmul.f32 %v4026_v10, %v4568_v14 }
 0x532   :  { %3793 = vmatmul.mubr.msk.f32.vlgmr.msra.gmra.mrb[32].mxu1 %vm1697_vm3, %v1871_v26  ;;  %3798 = vmatmul.mubr.msk.f32.vlgmr.msra.gmra.mrb[28].mxu0 %vm1697_vm3, %v1872_v24  ;;  %v3226_v24 = vld [vmem:[#allocation9 + $0x60] sm:$0xff]  ;;  %v4036_v26 = vld [vmem:[#allocation6] sm:$0xff] }
 0x533   :  { %3801 = vmatpush3.msra.mxu1 %v1889_v36  ;;  %3802 = vmatprep.mubr.msk.f32.mxu1 %vm4137_vm2, %v4136_v13 }
 0x534   :  { %3871 = vmatprep.subr.bf16.mxu1 %v3870_v39 }
 0x536   :  { %3803 = vmatmul.mubr.msk.f32.vlgmr.msra.gmra.mrb[34].mxu1 %vm1697_vm3, %v1873_v41 }
 0x537   :  { %3873 = vmatpush3.bf16.msra.mxu1 %v3870_v39 }
 0x538   :  { %3875 = vmatprep.subr.bf16.mxu1 %v3874_v44 }
 0x53b   :  { %3877 = vmatpush3.bf16.msra.mxu1 %v3874_v44 }
 0x5c5   :  { %v1959_v21 = vpop.f32.mrb[14].mxu0 }
 0x5c6   :  { %3058 = vst.msk [vmem:[#allocation5] sm:$0xff] %vm223_vm1, %v1959_v21  ;;  %v3729_v59 = vpop.f32.mrb[15].mxu0 }
 0x5c9   :  { %v2032_v27 = vpop.f32.mrb[20].mxu1 }
 0x5ca   :  { %3059 = vst.msk [vmem:[#allocation5 + $0x8] sm:$0xff] %vm223_vm1, %v2032_v27  ;;  %v3734_v5 = vpop.f32.mrb[21].mxu1 }
 0x5e4   :  { %v2105_v48 = vpop.f32.mrb[16].mxu0 }
 0x5e5   :  { %v3739_v16 = vpop.f32.mrb[17].mxu0  ;;  %3062 = vrot.lane.b32.xlu0 %v2105_v48, %s4161_s18 }
 0x5e8   :  { %v2251_v18 = vpop.f32.mrb[18].mxu0 }
 0x5e9   :  { %v3749_v1 = vpop.f32.mrb[19].mxu0  ;;  %3073 = vrot.lane.b32.xlu0 %v2251_v18, %s4134_s25  ;;  %v3268_v18 = vld [vmem:[#allocation11 + $0x20] sm:$0xff] }
 0x5ea   :  { %v3269_v1 = vld [vmem:[#allocation11 + $0x28] sm:$0xff] }
 0x5ec   :  { %v2178_v13 = vpop.f32.mrb[22].mxu1 }
 0x5ed   :  { %3064 = vrot.lane.b32.xlu1 %v2178_v13, %s4161_s18  ;;  %v3744_v14 = vpop.f32.mrb[23].mxu1  ;;  %v3878_v13 = vpack.c.bf16 %v3269_v1, %v3268_v18 }
 0x5ee   :  { %v3270_v14 = vld [vmem:[#allocation11 + $0x30] sm:$0xff] }
 0x5ef   :  { %3879 = vmatprep.subr.bf16.mxu1 %v3878_v13 }
 0x5f0   :  { %v2397_v29 = vpop.f32.mrb[20].mxu0 }
 0x5f1   :  { %v2324_v30 = vpop.f32.mrb[24].mxu1  ;;  %v3759_v3 = vpop.f32.mrb[21].mxu0  ;;  %3084 = vrot.lane.b32.xlu0 %v2397_v29, %s4162_s19  ;;  %v3271_v29 = vld [vmem:[#allocation11 + $0x38] sm:$0xff] }
 0x5f2   :  { %3075 = vrot.lane.b32.xlu1 %v2324_v30, %s4134_s25  ;;  %v3754_v7 = vpop.f32.mrb[25].mxu1  ;;  %v3882_v30 = vpack.c.bf16 %v3271_v29, %v3270_v14  ;;  %v3365_v3 = vld [vmem:[#allocation11 + $0x60] sm:$0xff] }
 0x5f3   :  { %v3366_v7 = vld [vmem:[#allocation11 + $0x68] sm:$0xff] }
 0x5f4   :  { %v2543_v53 = vpop.f32.mrb[22].mxu0 }
 0x5f5   :  { %v2470_v31 = vpop.f32.mrb[26].mxu1  ;;  %v3769_v33 = vpop.f32.mrb[23].mxu0  ;;  %3095 = vrot.lane.b32.xlu0 %v2543_v53, %s4163_s20  ;;  %v3367_v53 = vld [vmem:[#allocation11 + $0x70] sm:$0xff] }
 0x5f6   :  { %3086 = vrot.lane.b32.xlu1 %v2470_v31, %s4162_s19  ;;  %v3764_v19 = vpop.f32.mrb[27].mxu1  ;;  %v3886_v31 = vpack.c.bf16 %v3366_v7, %v3365_v3  ;;  %v3368_v33 = vld [vmem:[#allocation11 + $0x78] sm:$0xff] }
 0x5f7   :  { %v3890_v19 = vpack.c.bf16 %v3368_v33, %v3367_v53 }
 0x5f8   :  { %v2689_v37 = vpop.f32.mrb[24].mxu0  ;;  %3887 = vmatprep.subr.bf16.mxu0 %v3886_v31 }
 0x5f9   :  { %3106 = vrot.lane.b32.xlu0 %v2689_v37, %s4164_s0  ;;  %v3779_v38 = vpop.f32.mrb[25].mxu0  ;;  %v3369_v37 = vld [vmem:[#allocation11 + $0x80] sm:$0xff]  ;;  %3889 = vmatpush3.bf16.msra.mxu0 %v3886_v31 }
 0x5fa   :  { %v3370_v38 = vld [vmem:[#allocation11 + $0x88] sm:$0xff]  ;;  %3891 = vmatprep.subr.bf16.mxu0 %v3890_v19 }
 0x5fb   :  { %v3894_v28 = vpack.c.bf16 %v3370_v38, %v3369_v37  ;;  %v3382_v37 = vld [vmem:[#allocation9 + $0x78] sm:$0xff]  ;;  %v3381_v38 = vld [vmem:[#allocation9 + $0x70] sm:$0xff] }
 0x5fd   :  { %v2616_v40 = vpop.f32.mrb[28].mxu1  ;;  %3893 = vmatpush3.bf16.msra.mxu0 %v3890_v19 }
 0x5fe   :  { %3097 = vrot.lane.b32.xlu1 %v2616_v40, %s4163_s20  ;;  %v3774_v62 = vpop.f32.mrb[29].mxu1  ;;  %3895 = vmatprep.subr.bf16.mxu0 %v3894_v28 }
 0x601   :  { %v2762_v45 = vpop.f32.mrb[30].mxu1  ;;  %v2835_v46 = vpop.f32.mrb[26].mxu0  ;;  %3897 = vmatpush3.bf16.msra.mxu0 %v3894_v28 }
 0x602   :  { %3117 = vrot.lane.b32.xlu0 %v2835_v46, %s4165_s15  ;;  %v3789_v32 = vpop.f32.mrb[27].mxu0  ;;  %3108 = vrot.lane.b32.xlu1 %v2762_v45, %s4164_s0  ;;  %v3784_v43 = vpop.f32.mrb[31].mxu1 }
 0x605   :  { %v2908_v49 = vpop.f32.mrb[32].mxu1  ;;  %v2981_v34 = vpop.f32.mrb[28].mxu0 }
 0x606   :  { %3128 = vrot.lane.b32.xlu0 %v2981_v34, %s4166_s2  ;;  %v3799_v54 = vpop.f32.mrb[29].mxu0  ;;  %3119 = vrot.lane.b32.xlu1 %v2908_v49, %s4165_s15  ;;  %v3794_v55 = vpop.f32.mrb[33].mxu1 }
 0x609   :  { %v3054_v56 = vpop.f32.mrb[34].mxu1 }
 0x60a   :  { %3130 = vrot.lane.b32.xlu1 %v3054_v56, %s4166_s2  ;;  %v3804_v51 = vpop.f32.mrb[35].mxu1 }
 0x60b   :  { %v3260_v51 = vld [vmem:[#allocation9 + $0x40] sm:$0xff] }
 0x657   :  { %v3063_v57 = vpop.permute.xlu0 %3062 }
 0x658   :  { %3069 = vst.msk [vmem:[#allocation5] sm:$0xff] %vm3068_vm4, %v3063_v57 }
 0x65b   :  { %v3074_v47 = vpop.permute.xlu0 %3073 }
 0x65c   :  { %3080 = vst.msk [vmem:[#allocation5] sm:$0xff] %vm3079_vm5, %v3074_v47  ;;  %v3264_v47 = vld [vmem:[#allocation9 + $0x50] sm:$0xff] }
 0x65f   :  { %v3065_v58 = vpop.permute.xlu1 %3064 }
 0x660   :  { %3070 = vst.msk [vmem:[#allocation5 + $0x8] sm:$0xff] %vm3068_vm4, %v3065_v58 }
 0x663   :  { %v3085_v42 = vpop.permute.xlu0 %3084 }
 0x664   :  { %3091 = vst.msk [vmem:[#allocation5] sm:$0xff] %vm3090_vm6, %v3085_v42  ;;  %v3076_v61 = vpop.permute.xlu1 %3075 }
 0x665   :  { %3081 = vst.msk [vmem:[#allocation5 + $0x8] sm:$0xff] %vm3079_vm5, %v3076_v61 }
 0x667   :  { %v3096_v50 = vpop.permute.xlu0 %3095 }
 0x668   :  { %3102 = vst.msk [vmem:[#allocation5] sm:$0xff] %vm3101_vm7, %v3096_v50  ;;  %v3087_v60 = vpop.permute.xlu1 %3086  ;;  %v3261_v50 = vld [vmem:[#allocation9 + $0x48] sm:$0xff] }
 0x669   :  { %3092 = vst.msk [vmem:[#allocation5 + $0x8] sm:$0xff] %vm3090_vm6, %v3087_v60 }
 0x66b   :  { %v3107_v63 = vpop.permute.xlu0 %3106 }
 0x66c   :  { %3113 = vst.msk [vmem:[#allocation5] sm:$0xff] %vm3112_vm8, %v3107_v63 }
 0x670   :  { %v3098_v0 = vpop.permute.xlu1 %3097 }
 0x671   :  { %3103 = vst.msk [vmem:[#allocation5 + $0x8] sm:$0xff] %vm3101_vm7, %v3098_v0  ;;  %v3265_v0 = vld [vmem:[#allocation9 + $0x58] sm:$0xff] }
 0x674   :  { %v3118_v2 = vpop.permute.xlu0 %3117  ;;  %v3109_v4 = vpop.permute.xlu1 %3108 }
 0x675   :  { %3124 = vst.msk [vmem:[#allocation5] sm:$0xff] %vm3123_vm9, %v3118_v2 }
 0x676   :  { %3114 = vst.msk [vmem:[#allocation5 + $0x8] sm:$0xff] %vm3112_vm8, %v3109_v4 }
 0x678   :  { %v3129_v52 = vpop.permute.xlu0 %3128  ;;  %v3120_v8 = vpop.permute.xlu1 %3119 }
 0x679   :  { %3135 = vst.msk [vmem:[#allocation5] sm:$0xff] %vm3134_vm10, %v3129_v52  ;;  %v3371_v52 = vld [vmem:[#allocation11 + $0x90] sm:$0xff] }
 0x67a   :  { %3125 = vst.msk [vmem:[#allocation5 + $0x8] sm:$0xff] %vm3123_vm9, %v3120_v8  ;;  %v3372_v8 = vld [vmem:[#allocation11 + $0x98] sm:$0xff] }
 0x67c   :  { %v3131_v9 = vpop.permute.xlu1 %3130 }
 0x67d   :  { %3136 = vst.msk [vmem:[#allocation5 + $0x8] sm:$0xff] %vm3134_vm10, %v3131_v9  ;;  %v3898_v9 = vpack.c.bf16 %v3372_v8, %v3371_v52 }
 0x67f   :  { %3899 = vmatprep.subr.bf16.mxu0 %v3898_v9 }
 0x680   :  { %v3141_v11 = vld [vmem:[#allocation5] sm:$0xff]  ;;  %3901 = vmatpush3.bf16.msra.mxu0 %v3898_v9 }
 0x681   :  { %3813 = vmatprep.mubr.msk.f32.mxu1 %vm58_vm0, %v3141_v11  ;;  %v3373_v11 = vld [vmem:[#allocation11 + $0xa0] sm:$0xff] }
 0x684   :  { %v3142_v12 = vld [vmem:[#allocation5 + $0x8] sm:$0xff] }
 0x685   :  { %3814 = vmatmul.mubr.msk.f32.vlgmr.msra.gmra.mrb[36].mxu1 %vm58_vm0, %v3142_v12  ;;  %v3374_v12 = vld [vmem:[#allocation11 + $0xa8] sm:$0xff] }
 0x686   :  { %3881 = vmatpush3.bf16.msra.mxu1 %v3878_v13 }
 0x687   :  { %3883 = vmatprep.subr.bf16.mxu1 %v3882_v30 }
 0x68a   :  { %3885 = vmatpush3.bf16.msra.mxu1 %v3882_v30 }
 0x758   :  { %v3815_v17 = vpop.f32.mrb[36].mxu1 }
 0x759   :  { %v3225_v22 = vadd.f32 %v4035_v20, %v3815_v17  ;;  %v3215_v23 = vpop.f32.mrb[37].mxu1  ;;  %v3902_v17 = vpack.c.bf16 %v3374_v12, %v3373_v11  ;;  %v3376_v20 = vld [vmem:[#allocation11 + $0xb8] sm:$0xff] }
 0x75a   :  { %v3224_v36 = vadd.f32 %v4036_v26, %v3215_v23  ;;  %v3377_v23 = vld [vmem:[#allocation11 + $0xc0] sm:$0xff] }
 0x75b   :  { %v4660_v10 = vadd.f32 %v3227_v6, %v3225_v22  ;;  %3903 = vmatprep.subr.bf16.mxu0 %v3902_v17  ;;  %v3375_v6 = vld [vmem:[#allocation11 + $0xb0] sm:$0xff] }
 0x75c   :  { %v4662_v41 = vadd.f32 %v3226_v24, %v3224_v36  ;;  %3905 = vmatpush3.bf16.msra.mxu0 %v3902_v17  ;;  %v3906_v22 = vpack.c.bf16 %v3376_v20, %v3375_v6  ;;  %v3378_v24 = vld [vmem:[#allocation11 + $0xc8] sm:$0xff]  ;;  %v3379_v36 = vld [vmem:[#allocation11 + $0xd0] sm:$0xff] }
 0x75d   :  { %v3233_v21 = vsel %vm58_vm0, %v4660_v10, 0.0  ;;  %v3239_v48 = vmul.f32 %v4660_v10, %v4660_v10  ;;  %v3910_v26 = vpack.c.bf16 %v3378_v24, %v3377_v23 }
 0x75e   :  { %3234 = vadd.xlane.f32.xlu1 %v3233_v21  ;;  %v3230_v59 = vsel %vm58_vm0, %v4662_v41, 0.0  ;;  %v3238_v27 = vmul.f32 %v4662_v41, %v4662_v41  ;;  %3907 = vmatprep.subr.bf16.mxu0 %v3906_v22  ;;  %v3380_v21 = vld [vmem:[#allocation11 + $0xd8] sm:$0xff] }
 0x75f   :  { %3231 = vadd.xlane.f32.xlu0 %v3230_v59  ;;  %v3243_v16 = vsel %vm58_vm0, %v3239_v48, 0.0  ;;  %v3914_v59 = vpack.c.bf16 %v3380_v21, %v3379_v36 }
 0x760   :  { %v3240_v5 = vsel %vm58_vm0, %v3238_v27, 0.0  ;;  %3909 = vmatpush3.bf16.msra.mxu0 %v3906_v22  ;;  %v3273_v27 = vld [vmem:[#allocation9 + $0x98] sm:$0xff] }
 0x761   :  { %3911 = vmatprep.subr.bf16.mxu0 %v3910_v26 }
 0x763   :  { %3241 = vadd.xlane.f32.xlu0 %v3240_v5  ;;  %v3272_v5 = vld [vmem:[#allocation9 + $0x90] sm:$0xff] }
 0x764   :  { %3913 = vmatpush3.bf16.msra.mxu0 %v3910_v26 }
 0x765   :  { %3915 = vmatprep.subr.bf16.mxu0 %v3914_v59 }
 0x767   :  { %3244 = vadd.xlane.f32.xlu0 %v3243_v16 }
 0x768   :  { %3917 = vmatpush3.bf16.msra.mxu0 %v3914_v59 }
 0x7eb   :  { %v3235_v40 = vpop.xlane.xlu1 %3234 }
 0x7ec   :  { %v3232_v15 = vpop.xlane.xlu0 %3231  ;;  %v3237_v35 = vmul.f32 0.03125, %v3235_v40 }
 0x7ed   :  { %v3236_v39 = vmul.f32 0.03125, %v3232_v15 }
 0x7ee   :  { %v3249_v32 = vmul.f32 %v3237_v35, %v3237_v35  ;;  %v3253_v58 = vsub.f32 %v4660_v10, %v3237_v35 }
 0x7ef   :  { %v3248_v62 = vmul.f32 %v3236_v39, %v3236_v39  ;;  %v3252_v55 = vsub.f32 %v4662_v41, %v3236_v39 }
 0x7f0   :  { %v3242_v25 = vpop.xlane.xlu0 %3241 }
 0x7f1   :  { %v3246_v44 = vmul.f32 0.03125, %v3242_v25 }
 0x7f3   :  { %v3250_v45 = vsub.f32 %v3246_v44, %v3248_v62 }
 0x7f4   :  { %v3245_v46 = vpop.xlane.xlu0 %3244 }
 0x7f5   :  { %v3254_v43 = vadd.f32 1e-05, %v3250_v45  ;;  %v3247_v49 = vmul.f32 0.03125, %v3245_v46 }
 0x7f7   :  { %4027 = vrsqrt.f32 %v3254_v43  ;;  %v3251_v34 = vsub.f32 %v3247_v49, %v3249_v32 }
 0x7f9   :  { %v3255_v54 = vadd.f32 1e-05, %v3251_v34 }
 0x7fb   :  { %4029 = vrsqrt.f32 %v3255_v54 }
 0x801   :  { %v4028_v56 = vpop.eup %4027 }
 0x802   :  { %v3258_v57 = vmul.f32 %v4028_v56, %v3252_v55 }
 0x804   :  { %v3262_v42 = vmul.f32 %v3260_v51, %v3258_v57 }
 0x805   :  { %v4030_v61 = vpop.eup %4029 }
 0x806   :  { %v3259_v60 = vmul.f32 %v4030_v61, %v3253_v58  ;;  %v3266_v63 = vadd.f32 %v3264_v47, %v3262_v42 }
 0x808   :  { %3824 = vmatprep.mubr.msk.f32.mxu1 %vm58_vm0, %v3266_v63  ;;  %v3263_v2 = vmul.f32 %v3261_v50, %v3259_v60 }
 0x80a   :  { %v3267_v4 = vadd.f32 %v3265_v0, %v3263_v2 }
 0x80c   :  { %3825 = vmatmul.mubr.msk.f32.vlgmr.msra.gmra.mrb[38].mxu1 %vm58_vm0, %v3267_v4 }
 0x8df   :  { %v3826_v48 = vpop.f32.mrb[38].mxu1 }
 0x8e0   :  { %v3352_v16 = vadd.f32 %v3826_v48, %v3273_v27  ;;  %v3346_v18 = vpop.f32.mrb[39].mxu1 }
 0x8e1   :  { %v3347_v1 = vadd.f32 %v3346_v18, %v3272_v5 }
 0x8e2   :  { %v3358_v13 = vmul.f32 0.70710677, %v3352_v16  ;;  %v3356_v31 = vmul.f32 0.5, %v3352_v16 }
 0x8e3   :  { %v3357_v14 = vmul.f32 0.70710677, %v3347_v1  ;;  %v3355_v7 = vmul.f32 0.5, %v3347_v1 }
 0x8e4   :  { %4031 = verf.f32 %v3358_v13 }
 0x8e5   :  { %4033 = verf.f32 %v3357_v14 }
 0x8ee   :  { %v4032_v29 = vpop.eup %4031 }
 0x8ef   :  { %v4034_v30 = vpop.eup %4033  ;;  %v3362_v3 = vadd.f32 1.0, %v4032_v29 }
 0x8f0   :  { %v3361_v53 = vadd.f32 1.0, %v4034_v30 }
 0x8f1   :  { %v3364_v19 = vmul.f32 %v3362_v3, %v3356_v31 }
 0x8f2   :  { %v3363_v33 = vmul.f32 %v3361_v53, %v3355_v7 }
 0x8f4   :  { %3859 = vmatprep.mubr.f32.mxu0 %v3363_v33 }
 0x8f5   :  { %3860 = vmatmul.mubr.f32.vlgmr.msra.gmra.mrb[30].mxu0 %v3364_v19 }
 0x9c8   :  { %v3861_v28 = vpop.f32.mrb[30].mxu0 }
 0x9c9   :  { %v3455_v15 = vadd.f32 %v3861_v28, %v3382_v37  ;;  %v3449_v39 = vpop.f32.mrb[31].mxu0 }
 0x9ca   :  { %v3450_v40 = vadd.f32 %v3449_v39, %v3381_v38 }
 0x9cb   :  { %v3459_v25 = vadd.f32 %v3455_v15, %v4660_v10 }
 0x9cc   :  { %v3458_v35 = vadd.f32 %v3450_v40, %v4662_v41 }
 0x9cd   :  { %3461 = vst.msk [vmem:[#allocation12 + $0x8] sm:$0xff] %vm58_vm0, %v3459_v25 }
 0x9ce   :  { %3460 = vst.msk [vmem:[#allocation12] sm:$0xff] %vm58_vm0, %v3458_v35 }
 0x9cf   :  { %4114 = shalt.err (!%p4111_p0)
}
 0x9d0   :  { %s4115_s28 = scalar_lea.hbm %s4700_s3, 256 }
 0x9d1   :  { %p4116_p1 = scmp.ne.s32.totalorder %s4700_s3, %s4115_s28  ;;  %p4119_p2 = scmp.lt.u32.totalorder %s4115_s28, %s4700_s3 }
 0x9d3   :  { %p4121_p3 = pnand %p4119_p2, %p4116_p1 }
 0x9d5   :  { %4124 = shalt.err (!%p4121_p3)
}
 0x9d6   :  { %3473 = dma.vmem_to_hbm [thread:$0]  %s3468_s22, 256, %s4700_s3, [#allocation8], %s4133_s24, %s4133_s24, %s4134_s25  }
 0x9d7   :  { %4129 = dma.done.wait [#allocation8], 256  }
 0x9d8   :  { %4130 = vsyncadd [#allocation8], 4294967040 }
 0x9d9   :  { %3477 = vsyncpa [#allocation7], 1 }
 0x9da   :  { %3478 = vsyncpa [#allocation10], 1 }
 0x9db   :  { %3479 = vsyncpa [#allocation8], 1 }

</bundles_post_ra>
